<compile_context>
chip_gen: v6e
topology: v6e:2x2x1
jax: 0.10.0
libtpu: 0.0.40
codegen_flags: <defaults>
</compile_context>

<pallas_src>
import functools

import jax
import jax.numpy as jnp
from jax import lax
from jax.experimental import pallas as pl
from jax.experimental.pallas import tpu as pltpu


# ---------------------------------------------------------------------------
# Kernel
# ---------------------------------------------------------------------------
def _cnp_kernel(xy_ref,
                we1_ref, be1_ref,
                we2_ref, be2_ref,
                we3_ref, be3_ref,
                wd1_ref, wd1r_ref, bd1_ref,
                wd2_ref, bd2_ref,
                whead_ref, bhead_ref,
                out_ref, *, y_dim):
    bt, n, _ = xy_ref.shape           # batch tile, points per element
    out_pad = out_ref.shape[-1]       # padded head width (multiple of 128)
    r_pad = we3_ref.shape[-1]         # padded representation width

    cd = we2_ref.dtype                # MXU compute dtype (bf16 by default)
    dot = functools.partial(jnp.dot, preferred_element_type=jnp.float32)

    rows = bt * n
    xy = xy_ref[...]                                       # (bt, n, x+y), compute dtype
    xy_flat = xy.reshape(rows, xy.shape[-1])               # tiny bf16 slab; cheap

    # ---- Encoder: (x, y) -> r_i ----
    h = jnp.maximum(dot(xy_flat, we1_ref[...]) + be1_ref[...], 0.0)          # f32
    h = jnp.maximum(dot(h.astype(cd), we2_ref[...]) + be2_ref[...], 0.0)
    r_i = dot(h.astype(cd), we3_ref[...]) + be3_ref[...]                     # (rows, r_pad)

    # ---- Aggregate: mean over points, per batch element ----
    r = r_i.reshape(bt, n, r_pad).sum(axis=1) * (1.0 / n)                    # (bt, r_pad)

    # Broadcast r back to per-point rows at r-width (bf16); no h-width 3-D round trip.
    r_b = jnp.broadcast_to(r.astype(cd)[:, None, :], (bt, n, r_pad)).reshape(rows, r_pad)

    # ---- Decoder: (x, r) -> heads (both matmuls on the flattened row dimension) ----
    d = dot(xy_flat, wd1_ref[...]) + dot(r_b, wd1r_ref[...]) + bd1_ref[...]  # (rows, h_pad)
    d = jnp.maximum(d, 0.0)
    d = jnp.maximum(dot(d.astype(cd), wd2_ref[...]) + bd2_ref[...], 0.0)

    # ---- Fused mu / sigma heads (lane-dense, padded to out_pad) ----
    heads = dot(d.astype(cd), whead_ref[...]) + bhead_ref[...]               # (rows, out_pad)
    sig = 0.1 + 0.9 * jnp.logaddexp(heads, 0.0)          # softplus, numerically safe (EUP)
    lane = lax.broadcasted_iota(jnp.int32, heads.shape, 1)
    out = jnp.where(lane < y_dim, heads, sig)            # lanes [:y]=mu, [y:2y]=sigma, rest junk

    out_ref[...] = out.reshape(bt, n, out_pad).astype(out_ref.dtype)


# ---------------------------------------------------------------------------
# Wrapper helpers
# ---------------------------------------------------------------------------
def _round_up(v, m):
    return ((v + m - 1) // m) * m


def _choose_batch_tile(B, N, row_bytes, tile_budget_bytes, target_rows=1024):
    """Pick a divisor of B.  Prefer >= target_rows MXU rows per grid step (bounded by
    the VMEM tile budget) and an even number of grid steps >= 2 (v7x megacore)."""
    divisors = [d for d in range(1, B + 1) if B % d == 0]
    feasible = [d for d in divisors if d * N * row_bytes <= tile_budget_bytes] or [divisors[0]]

    def even_steps(d):
        s = B // d
        return s >= 2 and s % 2 == 0

    reaching = [d for d in feasible if d * N >= target_rows]
    if reaching:
        even_r = [d for d in reaching if even_steps(d)]
        return (even_r if even_r else reaching)[0]   # smallest tile reaching the target
    even_f = [d for d in feasible if even_steps(d)]
    best = feasible[-1]
    if even_f and even_f[-1] * 2 >= best:            # even split, losing at most 2x rows
        return even_f[-1]
    return best


def _vmem_capacity_bytes():
    try:
        return int(pltpu.get_tpu_info().vmem_capacity_bytes)
    except Exception:
        return 64 << 20   # conservative fallback (v7x-sized), safe on every generation


# ---------------------------------------------------------------------------
# Wrapper
# ---------------------------------------------------------------------------
def classifier_np_forward(x_target, y_target, params, *, batch_tile=None,
                          compute_dtype=jnp.bfloat16, out_dtype=jnp.float32,
                          single_buffer_weights=True):
    """Returns (mu, sigma) of the predictive Normal, each (B, N, y_dim)."""
    B, N, x_dim = x_target.shape
    _, _, y_dim = y_target.shape
    h_dim = params["we2"].shape[0]
    r_dim = params["we3"].shape[1]

    cd = compute_dtype
    f32 = jnp.float32
    c_in = x_dim + y_dim
    h_pad = _round_up(h_dim, 128)
    r_pad = _round_up(r_dim, 128)
    out_pad = _round_up(2 * y_dim, 128)

    # ---- Wrapper-side packing / zero-padding (one-time XLA ops, outside the kernel) ----
    xy = jnp.concatenate([x_target, y_target], axis=-1).astype(cd)       # (B, N, x+y)

    def padw(w, rows, cols):
        w = w.astype(f32)
        return jnp.pad(w, ((0, rows - w.shape[0]), (0, cols - w.shape[1])))

    we1 = padw(jnp.concatenate([params["we1x"], params["we1y"]], axis=0), c_in, h_pad).astype(cd)
    be1 = padw(params["be1"], 1, h_pad)
    we2 = padw(params["we2"], h_pad, h_pad).astype(cd)
    be2 = padw(params["be2"], 1, h_pad)
    we3 = padw(params["we3"], h_pad, r_pad).astype(cd)
    be3 = padw(params["be3"], 1, r_pad)
    # Zero-pad decoder layer-1 x-weight along K so the concatenated xy input is reused.
    wd1xy = jnp.concatenate(
        [params["wd1x"].astype(f32), jnp.zeros((y_dim, h_dim), f32)], axis=0)
    wd1xy = padw(wd1xy, c_in, h_pad).astype(cd)
    wd1r = padw(params["wd1r"], r_pad, h_pad).astype(cd)
    bd1 = padw(params["bd1"], 1, h_pad)
    wd2 = padw(params["wd2"], h_pad, h_pad).astype(cd)
    bd2 = padw(params["bd2"], 1, h_pad)
    # Heads fused + padded: lanes [0,y)=mu, [y,2y)=sigma, [2y,out_pad)=zero.
    whead = padw(jnp.concatenate([params["wmu"], params["wsig"]], axis=1), h_pad, out_pad).astype(cd)
    bhead = padw(jnp.concatenate([params["bmu"], params["bsig"]], axis=1), 1, out_pad)

    weights = [we1, be1, we2, be2, we3, be3,
               wd1xy, wd1r, bd1, wd2, bd2, whead, bhead]
    weight_bytes = int(sum(int(w.size) * w.dtype.itemsize for w in weights))
    wbuf = 1 if single_buffer_weights else 2

    # ---- Generation-aware VMEM budget (~75% of physical; counts activations too) ----
    vmem_cap = _vmem_capacity_bytes() * 3 // 4        # ≈48 MiB v7x, ≈96 MiB v5e/v6e
    in_row = c_in * jnp.dtype(cd).itemsize
    out_row = out_pad * jnp.dtype(out_dtype).itemsize
    act_row = (3 * h_pad + 2 * r_pad + 2 * out_pad) * 4   # f32 activation slabs per row
    row_bytes = 2 * in_row + 2 * out_row + act_row        # double-buffered I/O + activations
    tile_budget = max(vmem_cap - wbuf * weight_bytes - (4 << 20), 1 << 20)

    # ---- Batch tiling ----
    if batch_tile is None:
        batch_tile = _choose_batch_tile(B, N, row_bytes, tile_budget, target_rows=1024)
    assert B % batch_tile == 0
    n_tiles = B // batch_tile

    vmem_est = batch_tile * N * row_bytes + wbuf * weight_bytes + (4 << 20)
    vmem_limit = int(min(max(vmem_est, 32 << 20), vmem_cap))

    # ---- Cost estimate (advisory; padded dims = actual MXU work) ----
    flops_per_row = 2 * (c_in * h_pad + h_pad * h_pad + h_pad * r_pad
                         + c_in * h_pad + r_pad * h_pad + h_pad * h_pad + h_pad * out_pad)
    cost = pl.CostEstimate(
        flops=int(B * N * flops_per_row),
        transcendentals=int(2 * B * N * out_pad),
        bytes_accessed=int(int(xy.size) * xy.dtype.itemsize
                           + B * N * out_pad * jnp.dtype(out_dtype).itemsize
                           + weight_bytes))

    out_specs = pl.BlockSpec((batch_tile, N, out_pad), lambda b: (b, 0, 0))
    kernel = functools.partial(_cnp_kernel, y_dim=y_dim)

    def _build(single_buf):
        def _w_spec(a):
            nd = a.ndim
            idx = lambda b, _nd=nd: (0,) * _nd
            if single_buf:
                # Constant block index -> single-buffer the resident weights.
                return pl.BlockSpec(a.shape, idx, pipeline_mode=pl.Buffered(1))
            return pl.BlockSpec(a.shape, idx)

        in_specs = ([pl.BlockSpec((batch_tile, N, c_in), lambda b: (b, 0, 0))]
                    + [_w_spec(w) for w in weights])
        # TODO(synk): if xprof shows exposed input DMA, add pipeline_mode=pl.Buffered(3)
        #             to the xy BlockSpec only (costs one extra I/O tile of VMEM).
        return pl.pallas_call(
            kernel,
            out_shape=jax.ShapeDtypeStruct((B, N, out_pad), out_dtype),
            grid=(n_tiles,),
            in_specs=in_specs,
            out_specs=out_specs,
            compiler_params=pltpu.CompilerParams(
                dimension_semantics=("parallel",),
                vmem_limit_bytes=vmem_limit),
            cost_estimate=cost,
        )

    try:
        out = _build(single_buffer_weights)(xy, *weights)
    except Exception:
        # Portability fallback for lowerings that reject pl.Buffered(1).
        out = _build(False)(xy, *weights)

    mu = out[..., :y_dim].astype(jnp.float32)
    sigma = out[..., y_dim:2 * y_dim].astype(jnp.float32)
    return mu, sigma


# ---------------------------------------------------------------------------
# Init + pure-JAX reference (mirrors the kernel's bf16-matmul / f32-accumulate math)
# ---------------------------------------------------------------------------
def init_params(key, x_dim, y_dim, r_dim, h_dim):
    """Deterministic PyTorch-Linear-style init (uniform(-1/sqrt(fan_in), 1/sqrt(fan_in)))."""
    keys = jax.random.split(key, 16)
    ki = iter(keys)

    def lin(k, fan_in, shape):
        bound = 1.0 / jnp.sqrt(fan_in)
        return jax.random.uniform(k, shape, jnp.float32, -bound, bound)

    p = {}
    p["we1x"] = lin(next(ki), x_dim + y_dim, (x_dim, h_dim))
    p["we1y"] = lin(next(ki), x_dim + y_dim, (y_dim, h_dim))
    p["be1"] = lin(next(ki), x_dim + y_dim, (1, h_dim))
    p["we2"] = lin(next(ki), h_dim, (h_dim, h_dim))
    p["be2"] = lin(next(ki), h_dim, (1, h_dim))
    p["we3"] = lin(next(ki), h_dim, (h_dim, r_dim))
    p["be3"] = lin(next(ki), h_dim, (1, r_dim))
    p["wd1x"] = lin(next(ki), x_dim + r_dim, (x_dim, h_dim))
    p["wd1r"] = lin(next(ki), x_dim + r_dim, (r_dim, h_dim))
    p["bd1"] = lin(next(ki), x_dim + r_dim, (1, h_dim))
    p["wd2"] = lin(next(ki), h_dim, (h_dim, h_dim))
    p["bd2"] = lin(next(ki), h_dim, (1, h_dim))
    p["wmu"] = lin(next(ki), h_dim, (h_dim, y_dim))
    p["bmu"] = lin(next(ki), h_dim, (1, y_dim))
    p["wsig"] = lin(next(ki), h_dim, (h_dim, y_dim))
    p["bsig"] = lin(next(ki), h_dim, (1, y_dim))
    return p


def _ref_dot(a, b):
    # Same bf16-operand / f32-accumulate contraction the kernel uses.
    return jnp.dot(a.astype(jnp.bfloat16), b.astype(jnp.bfloat16),
                   preferred_element_type=jnp.float32)


def _reference_forward(x, y, p):
    B, N, _ = x.shape
    xy = jnp.concatenate([x, y], axis=-1)
    we1 = jnp.concatenate([p["we1x"], p["we1y"]], axis=0)
    h = jax.nn.relu(_ref_dot(xy, we1) + p["be1"])
    h = jax.nn.relu(_ref_dot(h, p["we2"]) + p["be2"])
    r_i = _ref_dot(h, p["we3"]) + p["be3"]
    r = jnp.sum(r_i, axis=1) * (1.0 / N)                    # (B, r_dim)
    rh = _ref_dot(r, p["wd1r"])[:, None, :]                 # (B, 1, h)
    d = jax.nn.relu(_ref_dot(x, p["wd1x"]) + rh + p["bd1"])
    d = jax.nn.relu(_ref_dot(d, p["wd2"]) + p["bd2"])
    mu = _ref_dot(d, p["wmu"]) + p["bmu"]
    sigma = 0.1 + 0.9 * jnp.logaddexp(_ref_dot(d, p["wsig"]) + p["bsig"], 0.0)
    return mu, sigma


if __name__ == "__main__":
    # Small shapes consistent with the module's forward signature.
    B, N = 2, 8            # batch_size, num_target points
    x_dim, y_dim = 4, 3    # feature dim, number of classes (one-hot y)
    r_dim, h_dim = 16, 32

    key = jax.random.PRNGKey(0)
    k_param, k_x, k_y = jax.random.split(key, 3)

    params = init_params(k_param, x_dim, y_dim, r_dim, h_dim)
    x_target = jax.random.normal(k_x, (B, N, x_dim), jnp.float32)
    labels = jax.random.randint(k_y, (B, N), 0, y_dim)
    y_target = jax.nn.one_hot(labels, y_dim, dtype=jnp.float32)

    mu, sigma = classifier_np_forward(x_target, y_target, params)
    jax.block_until_ready((mu, sigma))

    mu_ref, sigma_ref = _reference_forward(x_target, y_target, params)
    assert mu.shape == (B, N, y_dim) and sigma.shape == (B, N, y_dim)
    assert jnp.allclose(mu, mu_ref, atol=1e-4, rtol=1e-4), \
        float(jnp.max(jnp.abs(mu - mu_ref)))
    assert jnp.allclose(sigma, sigma_ref, atol=1e-4, rtol=1e-4), \
        float(jnp.max(jnp.abs(sigma - sigma_ref)))
    assert bool(jnp.all(sigma > 0.0))

    print("KERNEL_OK")
</pallas_src>

<mosaic_0001>
module attributes {stable_mosaic.version = 11 : i64} {
  func.func @_cnp_kernel(%arg0: i32, %arg1: memref<1x8x7xbf16, #tpu.memory_space<vmem>>, %arg2: memref<7x128xbf16, #tpu.memory_space<vmem>>, %arg3: memref<1x128xf32, #tpu.memory_space<vmem>>, %arg4: memref<128x128xbf16, #tpu.memory_space<vmem>>, %arg5: memref<1x128xf32, #tpu.memory_space<vmem>>, %arg6: memref<128x128xbf16, #tpu.memory_space<vmem>>, %arg7: memref<1x128xf32, #tpu.memory_space<vmem>>, %arg8: memref<7x128xbf16, #tpu.memory_space<vmem>>, %arg9: memref<128x128xbf16, #tpu.memory_space<vmem>>, %arg10: memref<1x128xf32, #tpu.memory_space<vmem>>, %arg11: memref<128x128xbf16, #tpu.memory_space<vmem>>, %arg12: memref<1x128xf32, #tpu.memory_space<vmem>>, %arg13: memref<128x128xbf16, #tpu.memory_space<vmem>>, %arg14: memref<1x128xf32, #tpu.memory_space<vmem>>, %arg15: memref<1x8x128xf32, #tpu.memory_space<vmem>>) attributes {dimension_semantics = [#tpu.dimension_semantics<parallel>], iteration_bounds = array<i64: 2>, scalar_prefetch = 0 : i64, scratch_operands = 0 : i64, tpu.core_type = #tpu.core_type<tc>, window_params = [{transform_indices = @transform_0, window_bounds = array<i64: 1, 8, 7>}, {pipeline_mode = #tpu.pipeline_mode<synchronous>, transform_indices = @transform_1, window_bounds = array<i64: 7, 128>}, {pipeline_mode = #tpu.pipeline_mode<synchronous>, transform_indices = @transform_2, window_bounds = array<i64: 1, 128>}, {pipeline_mode = #tpu.pipeline_mode<synchronous>, transform_indices = @transform_3, window_bounds = array<i64: 128, 128>}, {pipeline_mode = #tpu.pipeline_mode<synchronous>, transform_indices = @transform_4, window_bounds = array<i64: 1, 128>}, {pipeline_mode = #tpu.pipeline_mode<synchronous>, transform_indices = @transform_5, window_bounds = array<i64: 128, 128>}, {pipeline_mode = #tpu.pipeline_mode<synchronous>, transform_indices = @transform_6, window_bounds = array<i64: 1, 128>}, {pipeline_mode = #tpu.pipeline_mode<synchronous>, transform_indices = @transform_7, window_bounds = array<i64: 7, 128>}, {pipeline_mode = #tpu.pipeline_mode<synchronous>, transform_indices = @transform_8, window_bounds = array<i64: 128, 128>}, {pipeline_mode = #tpu.pipeline_mode<synchronous>, transform_indices = @transform_9, window_bounds = array<i64: 1, 128>}, {pipeline_mode = #tpu.pipeline_mode<synchronous>, transform_indices = @transform_10, window_bounds = array<i64: 128, 128>}, {pipeline_mode = #tpu.pipeline_mode<synchronous>, transform_indices = @transform_11, window_bounds = array<i64: 1, 128>}, {pipeline_mode = #tpu.pipeline_mode<synchronous>, transform_indices = @transform_12, window_bounds = array<i64: 128, 128>}, {pipeline_mode = #tpu.pipeline_mode<synchronous>, transform_indices = @transform_13, window_bounds = array<i64: 1, 128>}, {transform_indices = @transform_14, window_bounds = array<i64: 1, 8, 128>}]} {
    %c0 = arith.constant 0 : index
    %c0_0 = arith.constant 0 : index
    %c0_1 = arith.constant 0 : index
    %0 = vector.load %arg1[%c0, %c0_0, %c0_1] : memref<1x8x7xbf16, #tpu.memory_space<vmem>>, vector<1x8x7xbf16>
    %1 = vector.shape_cast %0 : vector<1x8x7xbf16> to vector<8x7xbf16>
    %c0_2 = arith.constant 0 : index
    %c0_3 = arith.constant 0 : index
    %2 = vector.load %arg2[%c0_2, %c0_3] : memref<7x128xbf16, #tpu.memory_space<vmem>>, vector<7x128xbf16>
    %cst = arith.constant dense<0.000000e+00> : vector<8x128xf32>
    %3 = tpu.matmul %1, %2, %cst {dimension_numbers = #tpu.dot_dimension_numbers<[1], [0], [0], [1], [0, 0, 1, 1], [], []>} : vector<8x7xbf16>, vector<7x128xbf16>, vector<8x128xf32> -> vector<8x128xf32>
    %c0_4 = arith.constant 0 : index
    %c0_5 = arith.constant 0 : index
    %4 = vector.load %arg3[%c0_4, %c0_5] : memref<1x128xf32, #tpu.memory_space<vmem>>, vector<1x128xf32>
    %5 = vector.broadcast %4 : vector<1x128xf32> to vector<8x128xf32>
    %6 = arith.addf %3, %5 : vector<8x128xf32>
    %cst_6 = arith.constant 0.000000e+00 : f32
    %7 = vector.broadcast %cst_6 : f32 to vector<8x128xf32>
    %8 = arith.maximumf %6, %7 : vector<8x128xf32>
    %9 = arith.truncf %8 : vector<8x128xf32> to vector<8x128xbf16>
    %c0_7 = arith.constant 0 : index
    %c0_8 = arith.constant 0 : index
    %10 = vector.load %arg4[%c0_7, %c0_8] : memref<128x128xbf16, #tpu.memory_space<vmem>>, vector<128x128xbf16>
    %cst_9 = arith.constant dense<0.000000e+00> : vector<8x128xf32>
    %11 = tpu.matmul %9, %10, %cst_9 {dimension_numbers = #tpu.dot_dimension_numbers<[1], [0], [0], [1], [0, 0, 1, 1], [], []>} : vector<8x128xbf16>, vector<128x128xbf16>, vector<8x128xf32> -> vector<8x128xf32>
    %c0_10 = arith.constant 0 : index
    %c0_11 = arith.constant 0 : index
    %12 = vector.load %arg5[%c0_10, %c0_11] : memref<1x128xf32, #tpu.memory_space<vmem>>, vector<1x128xf32>
    %13 = vector.broadcast %12 : vector<1x128xf32> to vector<8x128xf32>
    %14 = arith.addf %11, %13 : vector<8x128xf32>
    %cst_12 = arith.constant 0.000000e+00 : f32
    %15 = vector.broadcast %cst_12 : f32 to vector<8x128xf32>
    %16 = arith.maximumf %14, %15 : vector<8x128xf32>
    %17 = arith.truncf %16 : vector<8x128xf32> to vector<8x128xbf16>
    %c0_13 = arith.constant 0 : index
    %c0_14 = arith.constant 0 : index
    %18 = vector.load %arg6[%c0_13, %c0_14] : memref<128x128xbf16, #tpu.memory_space<vmem>>, vector<128x128xbf16>
    %cst_15 = arith.constant dense<0.000000e+00> : vector<8x128xf32>
    %19 = tpu.matmul %17, %18, %cst_15 {dimension_numbers = #tpu.dot_dimension_numbers<[1], [0], [0], [1], [0, 0, 1, 1], [], []>} : vector<8x128xbf16>, vector<128x128xbf16>, vector<8x128xf32> -> vector<8x128xf32>
    %c0_16 = arith.constant 0 : index
    %c0_17 = arith.constant 0 : index
    %20 = vector.load %arg7[%c0_16, %c0_17] : memref<1x128xf32, #tpu.memory_space<vmem>>, vector<1x128xf32>
    %21 = vector.broadcast %20 : vector<1x128xf32> to vector<8x128xf32>
    %22 = arith.addf %19, %21 : vector<8x128xf32>
    %23 = vector.shape_cast %22 : vector<8x128xf32> to vector<1x8x128xf32>
    %cst_18 = arith.constant dense<0.000000e+00> : vector<1x128xf32>
    %24 = vector.multi_reduction <add>, %23, %cst_18 [1] : vector<1x8x128xf32> to vector<1x128xf32>
    %cst_19 = arith.constant 1.250000e-01 : f32
    %25 = vector.broadcast %cst_19 : f32 to vector<1x128xf32>
    %26 = arith.mulf %24, %25 : vector<1x128xf32>
    %27 = arith.truncf %26 : vector<1x128xf32> to vector<1x128xbf16>
    %28 = vector.shape_cast %27 : vector<1x128xbf16> to vector<1x1x128xbf16>
    %29 = vector.shape_cast %28 : vector<1x1x128xbf16> to vector<1x1x128xbf16>
    %30 = vector.broadcast %29 : vector<1x1x128xbf16> to vector<1x8x128xbf16>
    %31 = vector.shape_cast %30 : vector<1x8x128xbf16> to vector<8x128xbf16>
    %c0_20 = arith.constant 0 : index
    %c0_21 = arith.constant 0 : index
    %32 = vector.load %arg8[%c0_20, %c0_21] : memref<7x128xbf16, #tpu.memory_space<vmem>>, vector<7x128xbf16>
    %cst_22 = arith.constant dense<0.000000e+00> : vector<8x128xf32>
    %33 = tpu.matmul %1, %32, %cst_22 {dimension_numbers = #tpu.dot_dimension_numbers<[1], [0], [0], [1], [0, 0, 1, 1], [], []>} : vector<8x7xbf16>, vector<7x128xbf16>, vector<8x128xf32> -> vector<8x128xf32>
    %c0_23 = arith.constant 0 : index
    %c0_24 = arith.constant 0 : index
    %34 = vector.load %arg9[%c0_23, %c0_24] : memref<128x128xbf16, #tpu.memory_space<vmem>>, vector<128x128xbf16>
    %cst_25 = arith.constant dense<0.000000e+00> : vector<8x128xf32>
    %35 = tpu.matmul %31, %34, %cst_25 {dimension_numbers = #tpu.dot_dimension_numbers<[1], [0], [0], [1], [0, 0, 1, 1], [], []>} : vector<8x128xbf16>, vector<128x128xbf16>, vector<8x128xf32> -> vector<8x128xf32>
    %36 = arith.addf %33, %35 : vector<8x128xf32>
    %c0_26 = arith.constant 0 : index
    %c0_27 = arith.constant 0 : index
    %37 = vector.load %arg10[%c0_26, %c0_27] : memref<1x128xf32, #tpu.memory_space<vmem>>, vector<1x128xf32>
    %38 = vector.broadcast %37 : vector<1x128xf32> to vector<8x128xf32>
    %39 = arith.addf %36, %38 : vector<8x128xf32>
    %cst_28 = arith.constant 0.000000e+00 : f32
    %40 = vector.broadcast %cst_28 : f32 to vector<8x128xf32>
    %41 = arith.maximumf %39, %40 : vector<8x128xf32>
    %42 = arith.truncf %41 : vector<8x128xf32> to vector<8x128xbf16>
    %c0_29 = arith.constant 0 : index
    %c0_30 = arith.constant 0 : index
    %43 = vector.load %arg11[%c0_29, %c0_30] : memref<128x128xbf16, #tpu.memory_space<vmem>>, vector<128x128xbf16>
    %cst_31 = arith.constant dense<0.000000e+00> : vector<8x128xf32>
    %44 = tpu.matmul %42, %43, %cst_31 {dimension_numbers = #tpu.dot_dimension_numbers<[1], [0], [0], [1], [0, 0, 1, 1], [], []>} : vector<8x128xbf16>, vector<128x128xbf16>, vector<8x128xf32> -> vector<8x128xf32>
    %c0_32 = arith.constant 0 : index
    %c0_33 = arith.constant 0 : index
    %45 = vector.load %arg12[%c0_32, %c0_33] : memref<1x128xf32, #tpu.memory_space<vmem>>, vector<1x128xf32>
    %46 = vector.broadcast %45 : vector<1x128xf32> to vector<8x128xf32>
    %47 = arith.addf %44, %46 : vector<8x128xf32>
    %cst_34 = arith.constant 0.000000e+00 : f32
    %48 = vector.broadcast %cst_34 : f32 to vector<8x128xf32>
    %49 = arith.maximumf %47, %48 : vector<8x128xf32>
    %50 = arith.truncf %49 : vector<8x128xf32> to vector<8x128xbf16>
    %c0_35 = arith.constant 0 : index
    %c0_36 = arith.constant 0 : index
    %51 = vector.load %arg13[%c0_35, %c0_36] : memref<128x128xbf16, #tpu.memory_space<vmem>>, vector<128x128xbf16>
    %cst_37 = arith.constant dense<0.000000e+00> : vector<8x128xf32>
    %52 = tpu.matmul %50, %51, %cst_37 {dimension_numbers = #tpu.dot_dimension_numbers<[1], [0], [0], [1], [0, 0, 1, 1], [], []>} : vector<8x128xbf16>, vector<128x128xbf16>, vector<8x128xf32> -> vector<8x128xf32>
    %c0_38 = arith.constant 0 : index
    %c0_39 = arith.constant 0 : index
    %53 = vector.load %arg14[%c0_38, %c0_39] : memref<1x128xf32, #tpu.memory_space<vmem>>, vector<1x128xf32>
    %54 = vector.broadcast %53 : vector<1x128xf32> to vector<8x128xf32>
    %55 = arith.addf %52, %54 : vector<8x128xf32>
    %cst_40 = arith.constant 0.000000e+00 : f32
    %56 = vector.broadcast %cst_40 : f32 to vector<8x128xf32>
    %57 = arith.maximumf %55, %56 : vector<8x128xf32>
    %58 = vector.broadcast %cst_40 : f32 to vector<8x128xf32>
    %59 = arith.subf %55, %58 : vector<8x128xf32>
    %60 = arith.cmpf one, %59, %59 : vector<8x128xf32>
    %61 = vector.broadcast %cst_40 : f32 to vector<8x128xf32>
    %62 = arith.addf %55, %61 : vector<8x128xf32>
    %63 = math.absf %59 : vector<8x128xf32>
    %cst_41 = arith.constant 0.000000e+00 : f32
    %64 = vector.broadcast %cst_41 : f32 to vector<8x128xf32>
    %65 = arith.subf %64, %63 : vector<8x128xf32>
    %66 = math.exp %65 : vector<8x128xf32>
    %67 = math.log1p %66 : vector<8x128xf32>
    %68 = arith.addf %57, %67 : vector<8x128xf32>
    %69 = arith.select %60, %62, %68 : vector<8x128xi1>, vector<8x128xf32>
    %cst_42 = arith.constant 0.899999976 : f32
    %70 = vector.broadcast %cst_42 : f32 to vector<8x128xf32>
    %71 = arith.mulf %70, %69 : vector<8x128xf32>
    %cst_43 = arith.constant 1.000000e-01 : f32
    %72 = vector.broadcast %cst_43 : f32 to vector<8x128xf32>
    %73 = arith.addf %72, %71 : vector<8x128xf32>
    %74 = tpu.iota {dimensions = array<i32: 1>} : vector<8x128xi32>
    %c3_i32 = arith.constant 3 : i32
    %75 = vector.broadcast %c3_i32 : i32 to vector<8x128xi32>
    %76 = arith.cmpi slt, %74, %75 : vector<8x128xi32>
    %77 = arith.select %76, %55, %73 : vector<8x128xi1>, vector<8x128xf32>
    %78 = vector.shape_cast %77 : vector<8x128xf32> to vector<1x8x128xf32>
    %c0_44 = arith.constant 0 : index
    %c0_45 = arith.constant 0 : index
    %c0_46 = arith.constant 0 : index
    %79 = vector.load %arg15[%c0_44, %c0_45, %c0_46] : memref<1x8x128xf32, #tpu.memory_space<vmem>>, vector<1x8x128xf32>
    tpu.vector_store %arg15[%c0_44, %c0_45, %c0_46], %78 {strides = array<i32>} : memref<1x8x128xf32, #tpu.memory_space<vmem>>, vector<1x8x128xf32>,
    return
  }
  func.func @transform_0(%arg0: i32) -> (i32, i32, i32) {
    %c0_i32 = arith.constant 0 : i32
    %c0_i32_0 = arith.constant 0 : i32
    %c0_i32_1 = arith.constant 0 : i32
    return %arg0, %c0_i32, %c0_i32_0 : i32, i32, i32
  }
  func.func @transform_1(%arg0: i32) -> (i32, i32) {
    %c0_i32 = arith.constant 0 : i32
    %c0_i32_0 = arith.constant 0 : i32
    %c0_i32_1 = arith.constant 0 : i32
    return %c0_i32, %c0_i32_0 : i32, i32
  }
  func.func @transform_2(%arg0: i32) -> (i32, i32) {
    %c0_i32 = arith.constant 0 : i32
    %c0_i32_0 = arith.constant 0 : i32
    %c0_i32_1 = arith.constant 0 : i32
    return %c0_i32, %c0_i32_0 : i32, i32
  }
  func.func @transform_3(%arg0: i32) -> (i32, i32) {
    %c0_i32 = arith.constant 0 : i32
    %c0_i32_0 = arith.constant 0 : i32
    %c0_i32_1 = arith.constant 0 : i32
    return %c0_i32, %c0_i32_0 : i32, i32
  }
  func.func @transform_4(%arg0: i32) -> (i32, i32) {
    %c0_i32 = arith.constant 0 : i32
    %c0_i32_0 = arith.constant 0 : i32
    %c0_i32_1 = arith.constant 0 : i32
    return %c0_i32, %c0_i32_0 : i32, i32
  }
  func.func @transform_5(%arg0: i32) -> (i32, i32) {
    %c0_i32 = arith.constant 0 : i32
    %c0_i32_0 = arith.constant 0 : i32
    %c0_i32_1 = arith.constant 0 : i32
    return %c0_i32, %c0_i32_0 : i32, i32
  }
  func.func @transform_6(%arg0: i32) -> (i32, i32) {
    %c0_i32 = arith.constant 0 : i32
    %c0_i32_0 = arith.constant 0 : i32
    %c0_i32_1 = arith.constant 0 : i32
    return %c0_i32, %c0_i32_0 : i32, i32
  }
  func.func @transform_7(%arg0: i32) -> (i32, i32) {
    %c0_i32 = arith.constant 0 : i32
    %c0_i32_0 = arith.constant 0 : i32
    %c0_i32_1 = arith.constant 0 : i32
    return %c0_i32, %c0_i32_0 : i32, i32
  }
  func.func @transform_8(%arg0: i32) -> (i32, i32) {
    %c0_i32 = arith.constant 0 : i32
    %c0_i32_0 = arith.constant 0 : i32
    %c0_i32_1 = arith.constant 0 : i32
    return %c0_i32, %c0_i32_0 : i32, i32
  }
  func.func @transform_9(%arg0: i32) -> (i32, i32) {
    %c0_i32 = arith.constant 0 : i32
    %c0_i32_0 = arith.constant 0 : i32
    %c0_i32_1 = arith.constant 0 : i32
    return %c0_i32, %c0_i32_0 : i32, i32
  }
  func.func @transform_10(%arg0: i32) -> (i32, i32) {
    %c0_i32 = arith.constant 0 : i32
    %c0_i32_0 = arith.constant 0 : i32
    %c0_i32_1 = arith.constant 0 : i32
    return %c0_i32, %c0_i32_0 : i32, i32
  }
  func.func @transform_11(%arg0: i32) -> (i32, i32) {
    %c0_i32 = arith.constant 0 : i32
    %c0_i32_0 = arith.constant 0 : i32
    %c0_i32_1 = arith.constant 0 : i32
    return %c0_i32, %c0_i32_0 : i32, i32
  }
  func.func @transform_12(%arg0: i32) -> (i32, i32) {
    %c0_i32 = arith.constant 0 : i32
    %c0_i32_0 = arith.constant 0 : i32
    %c0_i32_1 = arith.constant 0 : i32
    return %c0_i32, %c0_i32_0 : i32, i32
  }
  func.func @transform_13(%arg0: i32) -> (i32, i32) {
    %c0_i32 = arith.constant 0 : i32
    %c0_i32_0 = arith.constant 0 : i32
    %c0_i32_1 = arith.constant 0 : i32
    return %c0_i32, %c0_i32_0 : i32, i32
  }
  func.func @transform_14(%arg0: i32) -> (i32, i32, i32) {
    %c0_i32 = arith.constant 0 : i32
    %c0_i32_0 = arith.constant 0 : i32
    %c0_i32_1 = arith.constant 0 : i32
    return %arg0, %c0_i32, %c0_i32_0 : i32, i32, i32
  }
}

module attributes {stable_mosaic.version = 11 : i64} {
  func.func @_cnp_kernel(%arg0: i32, %arg1: memref<1x8x7xbf16, #tpu.memory_space<vmem>>, %arg2: memref<7x128xbf16, #tpu.memory_space<vmem>>, %arg3: memref<1x128xf32, #tpu.memory_space<vmem>>, %arg4: memref<128x128xbf16, #tpu.memory_space<vmem>>, %arg5: memref<1x128xf32, #tpu.memory_space<vmem>>, %arg6: memref<128x128xbf16, #tpu.memory_space<vmem>>, %arg7: memref<1x128xf32, #tpu.memory_space<vmem>>, %arg8: memref<7x128xbf16, #tpu.memory_space<vmem>>, %arg9: memref<128x128xbf16, #tpu.memory_space<vmem>>, %arg10: memref<1x128xf32, #tpu.memory_space<vmem>>, %arg11: memref<128x128xbf16, #tpu.memory_space<vmem>>, %arg12: memref<1x128xf32, #tpu.memory_space<vmem>>, %arg13: memref<128x128xbf16, #tpu.memory_space<vmem>>, %arg14: memref<1x128xf32, #tpu.memory_space<vmem>>, %arg15: memref<1x8x128xf32, #tpu.memory_space<vmem>>) attributes {dimension_semantics = [#tpu.dimension_semantics<parallel>], iteration_bounds = array<i64: 2>, scalar_prefetch = 0 : i64, scratch_operands = 0 : i64, tpu.core_type = #tpu.core_type<tc>, window_params = [{transform_indices = @transform_0, window_bounds = array<i64: 1, 8, 7>}, {pipeline_mode = #tpu.pipeline_mode<synchronous>, transform_indices = @transform_1, window_bounds = array<i64: 7, 128>}, {pipeline_mode = #tpu.pipeline_mode<synchronous>, transform_indices = @transform_2, window_bounds = array<i64: 1, 128>}, {pipeline_mode = #tpu.pipeline_mode<synchronous>, transform_indices = @transform_3, window_bounds = array<i64: 128, 128>}, {pipeline_mode = #tpu.pipeline_mode<synchronous>, transform_indices = @transform_4, window_bounds = array<i64: 1, 128>}, {pipeline_mode = #tpu.pipeline_mode<synchronous>, transform_indices = @transform_5, window_bounds = array<i64: 128, 128>}, {pipeline_mode = #tpu.pipeline_mode<synchronous>, transform_indices = @transform_6, window_bounds = array<i64: 1, 128>}, {pipeline_mode = #tpu.pipeline_mode<synchronous>, transform_indices = @transform_7, window_bounds = array<i64: 7, 128>}, {pipeline_mode = #tpu.pipeline_mode<synchronous>, transform_indices = @transform_8, window_bounds = array<i64: 128, 128>}, {pipeline_mode = #tpu.pipeline_mode<synchronous>, transform_indices = @transform_9, window_bounds = array<i64: 1, 128>}, {pipeline_mode = #tpu.pipeline_mode<synchronous>, transform_indices = @transform_10, window_bounds = array<i64: 128, 128>}, {pipeline_mode = #tpu.pipeline_mode<synchronous>, transform_indices = @transform_11, window_bounds = array<i64: 1, 128>}, {pipeline_mode = #tpu.pipeline_mode<synchronous>, transform_indices = @transform_12, window_bounds = array<i64: 128, 128>}, {pipeline_mode = #tpu.pipeline_mode<synchronous>, transform_indices = @transform_13, window_bounds = array<i64: 1, 128>}, {transform_indices = @transform_14, window_bounds = array<i64: 1, 8, 128>}]} {
    %c0 = arith.constant 0 : index
    %c0_0 = arith.constant 0 : index
    %c0_1 = arith.constant 0 : index
    %0 = vector.load %arg1[%c0, %c0_0, %c0_1] : memref<1x8x7xbf16, #tpu.memory_space<vmem>>, vector<1x8x7xbf16>
    %1 = vector.shape_cast %0 : vector<1x8x7xbf16> to vector<8x7xbf16>
    %c0_2 = arith.constant 0 : index
    %c0_3 = arith.constant 0 : index
    %2 = vector.load %arg2[%c0_2, %c0_3] : memref<7x128xbf16, #tpu.memory_space<vmem>>, vector<7x128xbf16>
    %cst = arith.constant dense<0.000000e+00> : vector<8x128xf32>
    %3 = tpu.matmul %1, %2, %cst {dimension_numbers = #tpu.dot_dimension_numbers<[1], [0], [0], [1], [0, 0, 1, 1], [], []>} : vector<8x7xbf16>, vector<7x128xbf16>, vector<8x128xf32> -> vector<8x128xf32>
    %c0_4 = arith.constant 0 : index
    %c0_5 = arith.constant 0 : index
    %4 = vector.load %arg3[%c0_4, %c0_5] : memref<1x128xf32, #tpu.memory_space<vmem>>, vector<1x128xf32>
    %5 = vector.broadcast %4 : vector<1x128xf32> to vector<8x128xf32>
    %6 = arith.addf %3, %5 : vector<8x128xf32>
    %cst_6 = arith.constant 0.000000e+00 : f32
    %7 = vector.broadcast %cst_6 : f32 to vector<8x128xf32>
    %8 = arith.maximumf %6, %7 : vector<8x128xf32>
    %9 = arith.truncf %8 : vector<8x128xf32> to vector<8x128xbf16>
    %c0_7 = arith.constant 0 : index
    %c0_8 = arith.constant 0 : index
    %10 = vector.load %arg4[%c0_7, %c0_8] : memref<128x128xbf16, #tpu.memory_space<vmem>>, vector<128x128xbf16>
    %cst_9 = arith.constant dense<0.000000e+00> : vector<8x128xf32>
    %11 = tpu.matmul %9, %10, %cst_9 {dimension_numbers = #tpu.dot_dimension_numbers<[1], [0], [0], [1], [0, 0, 1, 1], [], []>} : vector<8x128xbf16>, vector<128x128xbf16>, vector<8x128xf32> -> vector<8x128xf32>
    %c0_10 = arith.constant 0 : index
    %c0_11 = arith.constant 0 : index
    %12 = vector.load %arg5[%c0_10, %c0_11] : memref<1x128xf32, #tpu.memory_space<vmem>>, vector<1x128xf32>
    %13 = vector.broadcast %12 : vector<1x128xf32> to vector<8x128xf32>
    %14 = arith.addf %11, %13 : vector<8x128xf32>
    %cst_12 = arith.constant 0.000000e+00 : f32
    %15 = vector.broadcast %cst_12 : f32 to vector<8x128xf32>
    %16 = arith.maximumf %14, %15 : vector<8x128xf32>
    %17 = arith.truncf %16 : vector<8x128xf32> to vector<8x128xbf16>
    %c0_13 = arith.constant 0 : index
    %c0_14 = arith.constant 0 : index
    %18 = vector.load %arg6[%c0_13, %c0_14] : memref<128x128xbf16, #tpu.memory_space<vmem>>, vector<128x128xbf16>
    %cst_15 = arith.constant dense<0.000000e+00> : vector<8x128xf32>
    %19 = tpu.matmul %17, %18, %cst_15 {dimension_numbers = #tpu.dot_dimension_numbers<[1], [0], [0], [1], [0, 0, 1, 1], [], []>} : vector<8x128xbf16>, vector<128x128xbf16>, vector<8x128xf32> -> vector<8x128xf32>
    %c0_16 = arith.constant 0 : index
    %c0_17 = arith.constant 0 : index
    %20 = vector.load %arg7[%c0_16, %c0_17] : memref<1x128xf32, #tpu.memory_space<vmem>>, vector<1x128xf32>
    %21 = vector.broadcast %20 : vector<1x128xf32> to vector<8x128xf32>
    %22 = arith.addf %19, %21 : vector<8x128xf32>
    %23 = vector.shape_cast %22 : vector<8x128xf32> to vector<1x8x128xf32>
    %cst_18 = arith.constant dense<0.000000e+00> : vector<1x128xf32>
    %24 = vector.multi_reduction <add>, %23, %cst_18 [1] : vector<1x8x128xf32> to vector<1x128xf32>
    %cst_19 = arith.constant 1.250000e-01 : f32
    %25 = vector.broadcast %cst_19 : f32 to vector<1x128xf32>
    %26 = arith.mulf %24, %25 : vector<1x128xf32>
    %27 = arith.truncf %26 : vector<1x128xf32> to vector<1x128xbf16>
    %28 = vector.shape_cast %27 : vector<1x128xbf16> to vector<1x1x128xbf16>
    %29 = vector.shape_cast %28 : vector<1x1x128xbf16> to vector<1x1x128xbf16>
    %30 = vector.broadcast %29 : vector<1x1x128xbf16> to vector<1x8x128xbf16>
    %31 = vector.shape_cast %30 : vector<1x8x128xbf16> to vector<8x128xbf16>
    %c0_20 = arith.constant 0 : index
    %c0_21 = arith.constant 0 : index
    %32 = vector.load %arg8[%c0_20, %c0_21] : memref<7x128xbf16, #tpu.memory_space<vmem>>, vector<7x128xbf16>
    %cst_22 = arith.constant dense<0.000000e+00> : vector<8x128xf32>
    %33 = tpu.matmul %1, %32, %cst_22 {dimension_numbers = #tpu.dot_dimension_numbers<[1], [0], [0], [1], [0, 0, 1, 1], [], []>} : vector<8x7xbf16>, vector<7x128xbf16>, vector<8x128xf32> -> vector<8x128xf32>
    %c0_23 = arith.constant 0 : index
    %c0_24 = arith.constant 0 : index
    %34 = vector.load %arg9[%c0_23, %c0_24] : memref<128x128xbf16, #tpu.memory_space<vmem>>, vector<128x128xbf16>
    %cst_25 = arith.constant dense<0.000000e+00> : vector<8x128xf32>
    %35 = tpu.matmul %31, %34, %cst_25 {dimension_numbers = #tpu.dot_dimension_numbers<[1], [0], [0], [1], [0, 0, 1, 1], [], []>} : vector<8x128xbf16>, vector<128x128xbf16>, vector<8x128xf32> -> vector<8x128xf32>
    %36 = arith.addf %33, %35 : vector<8x128xf32>
    %c0_26 = arith.constant 0 : index
    %c0_27 = arith.constant 0 : index
    %37 = vector.load %arg10[%c0_26, %c0_27] : memref<1x128xf32, #tpu.memory_space<vmem>>, vector<1x128xf32>
    %38 = vector.broadcast %37 : vector<1x128xf32> to vector<8x128xf32>
    %39 = arith.addf %36, %38 : vector<8x128xf32>
    %cst_28 = arith.constant 0.000000e+00 : f32
    %40 = vector.broadcast %cst_28 : f32 to vector<8x128xf32>
    %41 = arith.maximumf %39, %40 : vector<8x128xf32>
    %42 = arith.truncf %41 : vector<8x128xf32> to vector<8x128xbf16>
    %c0_29 = arith.constant 0 : index
    %c0_30 = arith.constant 0 : index
    %43 = vector.load %arg11[%c0_29, %c0_30] : memref<128x128xbf16, #tpu.memory_space<vmem>>, vector<128x128xbf16>
    %cst_31 = arith.constant dense<0.000000e+00> : vector<8x128xf32>
    %44 = tpu.matmul %42, %43, %cst_31 {dimension_numbers = #tpu.dot_dimension_numbers<[1], [0], [0], [1], [0, 0, 1, 1], [], []>} : vector<8x128xbf16>, vector<128x128xbf16>, vector<8x128xf32> -> vector<8x128xf32>
    %c0_32 = arith.constant 0 : index
    %c0_33 = arith.constant 0 : index
    %45 = vector.load %arg12[%c0_32, %c0_33] : memref<1x128xf32, #tpu.memory_space<vmem>>, vector<1x128xf32>
    %46 = vector.broadcast %45 : vector<1x128xf32> to vector<8x128xf32>
    %47 = arith.addf %44, %46 : vector<8x128xf32>
    %cst_34 = arith.constant 0.000000e+00 : f32
    %48 = vector.broadcast %cst_34 : f32 to vector<8x128xf32>
    %49 = arith.maximumf %47, %48 : vector<8x128xf32>
    %50 = arith.truncf %49 : vector<8x128xf32> to vector<8x128xbf16>
    %c0_35 = arith.constant 0 : index
    %c0_36 = arith.constant 0 : index
    %51 = vector.load %arg13[%c0_35, %c0_36] : memref<128x128xbf16, #tpu.memory_space<vmem>>, vector<128x128xbf16>
    %cst_37 = arith.constant dense<0.000000e+00> : vector<8x128xf32>
    %52 = tpu.matmul %50, %51, %cst_37 {dimension_numbers = #tpu.dot_dimension_numbers<[1], [0], [0], [1], [0, 0, 1, 1], [], []>} : vector<8x128xbf16>, vector<128x128xbf16>, vector<8x128xf32> -> vector<8x128xf32>
    %c0_38 = arith.constant 0 : index
    %c0_39 = arith.constant 0 : index
    %53 = vector.load %arg14[%c0_38, %c0_39] : memref<1x128xf32, #tpu.memory_space<vmem>>, vector<1x128xf32>
    %54 = vector.broadcast %53 : vector<1x128xf32> to vector<8x128xf32>
    %55 = arith.addf %52, %54 : vector<8x128xf32>
    %cst_40 = arith.constant 0.000000e+00 : f32
    %56 = vector.broadcast %cst_40 : f32 to vector<8x128xf32>
    %57 = arith.maximumf %55, %56 : vector<8x128xf32>
    %58 = vector.broadcast %cst_40 : f32 to vector<8x128xf32>
    %59 = arith.subf %55, %58 : vector<8x128xf32>
    %60 = arith.cmpf one, %59, %59 : vector<8x128xf32>
    %61 = vector.broadcast %cst_40 : f32 to vector<8x128xf32>
    %62 = arith.addf %55, %61 : vector<8x128xf32>
    %63 = math.absf %59 : vector<8x128xf32>
    %cst_41 = arith.constant 0.000000e+00 : f32
    %64 = vector.broadcast %cst_41 : f32 to vector<8x128xf32>
    %65 = arith.subf %64, %63 : vector<8x128xf32>
    %66 = math.exp %65 : vector<8x128xf32>
    %67 = math.log1p %66 : vector<8x128xf32>
    %68 = arith.addf %57, %67 : vector<8x128xf32>
    %69 = arith.select %60, %62, %68 : vector<8x128xi1>, vector<8x128xf32>
    %cst_42 = arith.constant 0.899999976 : f32
    %70 = vector.broadcast %cst_42 : f32 to vector<8x128xf32>
    %71 = arith.mulf %70, %69 : vector<8x128xf32>
    %cst_43 = arith.constant 1.000000e-01 : f32
    %72 = vector.broadcast %cst_43 : f32 to vector<8x128xf32>
    %73 = arith.addf %72, %71 : vector<8x128xf32>
    %74 = tpu.iota {dimensions = array<i32: 1>} : vector<8x128xi32>
    %c3_i32 = arith.constant 3 : i32
    %75 = vector.broadcast %c3_i32 : i32 to vector<8x128xi32>
    %76 = arith.cmpi slt, %74, %75 : vector<8x128xi32>
    %77 = arith.select %76, %55, %73 : vector<8x128xi1>, vector<8x128xf32>
    %78 = vector.shape_cast %77 : vector<8x128xf32> to vector<1x8x128xf32>
    %c0_44 = arith.constant 0 : index
    %c0_45 = arith.constant 0 : index
    %c0_46 = arith.constant 0 : index
    %79 = vector.load %arg15[%c0_44, %c0_45, %c0_46] : memref<1x8x128xf32, #tpu.memory_space<vmem>>, vector<1x8x128xf32>
    tpu.vector_store %arg15[%c0_44, %c0_45, %c0_46], %78 {strides = array<i32>} : memref<1x8x128xf32, #tpu.memory_space<vmem>>, vector<1x8x128xf32>,
    return
  }
  func.func @transform_0(%arg0: i32) -> (i32, i32, i32) {
    %c0_i32 = arith.constant 0 : i32
    %c0_i32_0 = arith.constant 0 : i32
    %c0_i32_1 = arith.constant 0 : i32
    return %arg0, %c0_i32, %c0_i32_0 : i32, i32, i32
  }
  func.func @transform_1(%arg0: i32) -> (i32, i32) {
    %c0_i32 = arith.constant 0 : i32
    %c0_i32_0 = arith.constant 0 : i32
    %c0_i32_1 = arith.constant 0 : i32
    return %c0_i32, %c0_i32_0 : i32, i32
  }
  func.func @transform_2(%arg0: i32) -> (i32, i32) {
    %c0_i32 = arith.constant 0 : i32
    %c0_i32_0 = arith.constant 0 : i32
    %c0_i32_1 = arith.constant 0 : i32
    return %c0_i32, %c0_i32_0 : i32, i32
  }
  func.func @transform_3(%arg0: i32) -> (i32, i32) {
    %c0_i32 = arith.constant 0 : i32
    %c0_i32_0 = arith.constant 0 : i32
    %c0_i32_1 = arith.constant 0 : i32
    return %c0_i32, %c0_i32_0 : i32, i32
  }
  func.func @transform_4(%arg0: i32) -> (i32, i32) {
    %c0_i32 = arith.constant 0 : i32
    %c0_i32_0 = arith.constant 0 : i32
    %c0_i32_1 = arith.constant 0 : i32
    return %c0_i32, %c0_i32_0 : i32, i32
  }
  func.func @transform_5(%arg0: i32) -> (i32, i32) {
    %c0_i32 = arith.constant 0 : i32
    %c0_i32_0 = arith.constant 0 : i32
    %c0_i32_1 = arith.constant 0 : i32
    return %c0_i32, %c0_i32_0 : i32, i32
  }
  func.func @transform_6(%arg0: i32) -> (i32, i32) {
    %c0_i32 = arith.constant 0 : i32
    %c0_i32_0 = arith.constant 0 : i32
    %c0_i32_1 = arith.constant 0 : i32
    return %c0_i32, %c0_i32_0 : i32, i32
  }
  func.func @transform_7(%arg0: i32) -> (i32, i32) {
    %c0_i32 = arith.constant 0 : i32
    %c0_i32_0 = arith.constant 0 : i32
    %c0_i32_1 = arith.constant 0 : i32
    return %c0_i32, %c0_i32_0 : i32, i32
  }
  func.func @transform_8(%arg0: i32) -> (i32, i32) {
    %c0_i32 = arith.constant 0 : i32
    %c0_i32_0 = arith.constant 0 : i32
    %c0_i32_1 = arith.constant 0 : i32
    return %c0_i32, %c0_i32_0 : i32, i32
  }
  func.func @transform_9(%arg0: i32) -> (i32, i32) {
    %c0_i32 = arith.constant 0 : i32
    %c0_i32_0 = arith.constant 0 : i32
    %c0_i32_1 = arith.constant 0 : i32
    return %c0_i32, %c0_i32_0 : i32, i32
  }
  func.func @transform_10(%arg0: i32) -> (i32, i32) {
    %c0_i32 = arith.constant 0 : i32
    %c0_i32_0 = arith.constant 0 : i32
    %c0_i32_1 = arith.constant 0 : i32
    return %c0_i32, %c0_i32_0 : i32, i32
  }
  func.func @transform_11(%arg0: i32) -> (i32, i32) {
    %c0_i32 = arith.constant 0 : i32
    %c0_i32_0 = arith.constant 0 : i32
    %c0_i32_1 = arith.constant 0 : i32
    return %c0_i32, %c0_i32_0 : i32, i32
  }
  func.func @transform_12(%arg0: i32) -> (i32, i32) {
    %c0_i32 = arith.constant 0 : i32
    %c0_i32_0 = arith.constant 0 : i32
    %c0_i32_1 = arith.constant 0 : i32
    return %c0_i32, %c0_i32_0 : i32, i32
  }
  func.func @transform_13(%arg0: i32) -> (i32, i32) {
    %c0_i32 = arith.constant 0 : i32
    %c0_i32_0 = arith.constant 0 : i32
    %c0_i32_1 = arith.constant 0 : i32
    return %c0_i32, %c0_i32_0 : i32, i32
  }
  func.func @transform_14(%arg0: i32) -> (i32, i32, i32) {
    %c0_i32 = arith.constant 0 : i32
    %c0_i32_0 = arith.constant 0 : i32
    %c0_i32_1 = arith.constant 0 : i32
    return %arg0, %c0_i32, %c0_i32_0 : i32, i32, i32
  }
}

</mosaic_0001>

<bundles_post_ra>
// kernel: tpu_custom_call.1
= control target key start
LH: loop header
LB: loop body
LE: loop exit
PB: predicated region body
PF: predicated region fallthrough
CT: control target
= control target key end

     0   :  { %s2285_s0 = inlined_call_operand.vmem [shape: bf16[2,8,7], index: 0, kind: input, shape index: {}]   ;;  %s2286_s1 = inlined_call_operand.vmem [shape: bf16[7,128], index: 1, kind: input, shape index: {}]   ;;  %s2287_s2 = inlined_call_operand.vmem [shape: f32[1,128], index: 2, kind: input, shape index: {}]   ;;  %s2288_s3 = inlined_call_operand.hbm [shape: bf16[128,128], index: 3, kind: input, shape index: {}]   ;;  %s2289_s4 = inlined_call_operand.vmem [shape: f32[1,128], index: 4, kind: input, shape index: {}]   ;;  %s2290_s5 = inlined_call_operand.hbm [shape: bf16[128,128], index: 5, kind: input, shape index: {}]   ;;  %s2291_s6 = inlined_call_operand.vmem [shape: f32[1,128], index: 6, kind: input, shape index: {}]   ;;  %s2292_s7 = inlined_call_operand.vmem [shape: bf16[7,128], index: 7, kind: input, shape index: {}]   ;;  %s2293_s8 = inlined_call_operand.hbm [shape: bf16[128,128], index: 8, kind: input, shape index: {}]   ;;  %s2294_s9 = inlined_call_operand.vmem [shape: f32[1,128], index: 9, kind: input, shape index: {}]   ;;  %s2295_s10 = inlined_call_operand.hbm [shape: bf16[128,128], index: 10, kind: input, shape index: {}]   ;;  %s2296_s11 = inlined_call_operand.vmem [shape: f32[1,128], index: 11, kind: input, shape index: {}]   ;;  %s2297_s12 = inlined_call_operand.hbm [shape: bf16[128,128], index: 12, kind: input, shape index: {}]   ;;  %s2298_s13 = inlined_call_operand.vmem [shape: f32[1,128], index: 13, kind: input, shape index: {}]   ;;  %s2299_s14 = inlined_call_operand.hbm [shape: f32[2,8,128], index: 14, kind: output, shape index: {}]  }
   0x1   :  { %2307 = sst [smem:[#allocation22_spill]] %s2290_s5 }
   0x2   :  { %19 = vsyncpa [#allocation3], 0 }
   0x3   :  { %20 = vsyncpa [#allocation6], 0 }
   0x4   :  { %21 = vsyncpa [#allocation9], 0 }
   0x5   :  { %22 = vsyncpa [#allocation4], 0 }
   0x6   :  { %24 = vsyncpa [#allocation4 + $0x1], 0  ;;  %s2019_s29 = smov 0   ;;  %s2021_s30 = smov 0  }
   0x7   :  { %s2023_s15 = smov 0   ;;  %s2025_s16 = smov 0  }
   0x8 LB: > { %2308 = sst [smem:[#allocation16_spill]] %s1919_s29  ;;  %s2040_s17 = sadd.s32 4294967295, %s1931_s16   ;;  %s1931_s16 = sphi %s2025_s16, %s2329_s16   ;;  %s1927_s15 = sphi %s2023_s15, %s2331_s15   ;;  %s1923_s30 = sphi %s2021_s30, %s2333_s30   ;;  %s1919_s29 = sphi %s2019_s29, %s2332_s29  }
   0x9   : > { %2309 = sst [smem:[#allocation17_spill]] %s1927_s15  ;;  %s1361_s18 = sadd.s32 4294967294, %s1931_s16  }
   0xa   : > { %2310 = sst [smem:[#allocation18_spill]] %s1931_s16  ;;  %s2044_s19 = sadd.s32 1, %s1931_s16  }
   0xb   : > { %2311 = sst [smem:[#allocation19_spill]] %s2044_s19  ;;  %s336_s20 = sadd.s32 1, %s1927_s15 }
   0xc   : > { %s333_s21 = ssub.s32 %s1931_s16, %s2044_s19  ;;  %p346_p0 = scmp.ne.s32.totalorder %s1927_s15, %s1923_s30 }
   0xd   : > { %p334_p1 = scmp.eq.s32.totalorder %s333_s21, 0  ;;  %p347_p2 = scmp.eq.s32.totalorder %s2040_s17, 1 }
   0xe   : > { %p352_p3 = scmp.ne.s32.totalorder %s1923_s30, %s1919_s29  ;;  %p353_p4 = scmp.eq.s32.totalorder %s1361_s18, 1 }
   0xf   : > { %s2055_s22 = scalar_select %p334_p1, %s1927_s15, %s336_s20  }
  0x10   : > { %p2057_p5 = por %p347_p2, %p346_p0  ;;  %p2061_p6 = por %p353_p4, %p352_p3 }
  0x11   : > { %2312 = sst [smem:[#allocation20_spill]] %s2055_s22  ;;  %p1362_p7 = scmp.ge.s32.totalorder %s1931_s16, 1 }
  0x12   : > { %s2314_s24 = scalar_select %p2061_p6, 1, 0 }
  0x13   : > { %p360_p8 = scmp.lt.s32.totalorder %s1931_s16, 3  ;;  %p2306_p9 = scmp.eq.s32.totalorder %s2040_s17, 0 }
  0x14   : > { %2315 = sst [smem:[#allocation21_spill]] %s2314_s24  ;;  %s1933_s26 = smov [#allocation5]  }
  0x15   : > { %p2068_p10 = pnand %p1362_p7, %p360_p8  ;;  %s394_s27 = sshll.u32 %s1933_s26, 4  ;;  %s395_s27 = int_to_ptr.vmem [resolvable:$true] %s394_s27 }
  0x16   : > { %s1934_s18 = smov [#allocation8]   ;;  %s1935_s21 = smov [#allocation2]  }
  0x17   : > { %p1612_p11 = pneg %p2068_p10  ;;  %s429_s20 = sshll.u32 %s1934_s18, 4  ;;  %s430_s20 = int_to_ptr.vmem [resolvable:$true] %s429_s20 }
  0x18   : > { %s378_s22 = sshll.u32 %s1935_s21, 4  ;;  %s1740_s19 = scalar_lea.vmem %s395_s27, 1024  ;;  %s379_s22 = int_to_ptr.vmem [resolvable:$true] %s378_s22 }
  0x19   : > { %p2076_p12 = pnand %p2306_p9, %p1612_p11  ;;  %p1741_p0 = scmp.ne.s32.totalorder %s395_s27, %s1740_s19 }
  0x1a   : > { %p1748_p3 = scmp.lt.s32.totalorder %s395_s27, %s395_s27  ;;  %p1749_p4 = scmp.lt.s32.totalorder %s1740_s19, %s1740_s19 }
  0x1b   : > { %p2082_p13 = pneg %p2076_p12 }
  0x1c   : > { %p1750_p7 = por %p1749_p4, %p1748_p3 }
  0x1d   : > { %p1743_p1 = pnand %p1741_p0, %p2082_p13 }
  0x1f   : > { %p1744_p2 = pneg %p1743_p1 }
  0x21   : > { %p1751_p8 = pnand %p1750_p7, %p1744_p2 }
  0x23   : > { %1754 = shalt.err (!%p1751_p8)
}
  0x24   : > { %s1936_s26 = smov 64   ;;  %s1937_s18 = smov 4  }
  0x25   : > { %s2319_s5 = sld [smem:[#allocation22_spill]]  ;;  %s1766_s29 = scalar_lea.vmem %s430_s20, 1024 }
  0x26   : > { %p1767_p11 = scmp.ne.s32.totalorder %s430_s20, %s1766_s29  ;;  %p1774_p3 = scmp.lt.s32.totalorder %s430_s20, %s430_s20 }
  0x27   : > { %p1775_p2 = scmp.lt.s32.totalorder %s1766_s29, %s1766_s29 }
  0x28   : > { %p1769_p0 = pnand %p1767_p11, %p2082_p13 }
  0x29   : > { %p1776_p4 = por %p1775_p2, %p1774_p3 }
  0x2a   : > { %p1770_p1 = pneg %p1769_p0 }
  0x2b   : > { %1618 = dma.hbm_to_vmem [thread:$0]  (!%p2076_p12), %s2319_s5, 1024, %s395_s27, [#allocation6], %s1936_s26, %s1936_s26, %s1937_s18  }
  0x2c   : > { %p1777_p7 = pnand %p1776_p4, %p1770_p1 }
  0x2e   : > { %1780 = shalt.err (!%p1777_p7)
}
  0x2f   : > { %1624 = dma.hbm_to_vmem [thread:$0]  (!%p2076_p12), %s2295_s10, 1024, %s430_s20, [#allocation9], %s1936_s26, %s1936_s26, %s1937_s18  }
  0x30   : > { %s1792_s24 = scalar_lea.vmem %s379_s22, 1024  ;;  %p1800_p9 = scmp.lt.s32.totalorder %s379_s22, %s379_s22 }
  0x31   : > { %p1793_p8 = scmp.ne.s32.totalorder %s379_s22, %s1792_s24  ;;  %p1801_p3 = scmp.lt.s32.totalorder %s1792_s24, %s1792_s24 }
  0x33   : > { %p1795_p11 = pnand %p1793_p8, %p2082_p13  ;;  %p1802_p1 = por %p1801_p3, %p1800_p9 }
  0x35   : > { %p1796_p0 = pneg %p1795_p11 }
  0x37   : > { %p1803_p2 = pnand %p1802_p1, %p1796_p0 }
  0x39   : > { %1806 = shalt.err (!%p1803_p2)
}
  0x3a   : > { %1615 = dma.hbm_to_vmem [thread:$0]  (!%p2076_p12), %s2288_s3, 1024, %s379_s22, [#allocation3], %s1936_s26, %s1936_s26, %s1937_s18  }
  0x3b   : > { %s1938_s27 = smov [#allocation7]   ;;  %s1939_s21 = smov [#allocation10]  }
  0x3c   : > { %s413_s20 = sshll.u32 %s1938_s27, 4  ;;  %s445_s19 = sshll.u32 %s1939_s21, 4  ;;  %s414_s20 = int_to_ptr.vmem [resolvable:$true] %s413_s20  ;;  %s446_s19 = int_to_ptr.vmem [resolvable:$true] %s445_s19 }
  0x3d   : > { %s1818_s5 = scalar_lea.vmem %s414_s20, 1024  ;;  %p1826_p8 = scmp.lt.s32.totalorder %s414_s20, %s414_s20 }
  0x3e   : > { %p1819_p4 = scmp.ne.s32.totalorder %s414_s20, %s1818_s5  ;;  %p1827_p11 = scmp.lt.s32.totalorder %s1818_s5, %s1818_s5 }
  0x40   : > { %p1821_p9 = pnand %p1819_p4, %p2082_p13  ;;  %p1828_p0 = por %p1827_p11, %p1826_p8 }
  0x42   : > { %p1822_p7 = pneg %p1821_p9 }
  0x44   : > { %p1829_p3 = pnand %p1828_p0, %p1822_p7 }
  0x46   : > { %1832 = shalt.err (!%p1829_p3)
}
  0x47   : > { %1621 = dma.hbm_to_vmem [thread:$0]  (!%p2076_p12), %s2293_s8, 1024, %s414_s20, [#allocation6], %s1936_s26, %s1936_s26, %s1937_s18  }
  0x48   : > { %s1844_s29 = scalar_lea.vmem %s446_s19, 1024  ;;  %p1852_p9 = scmp.lt.s32.totalorder %s446_s19, %s446_s19 }
  0x49   : > { %p1845_p1 = scmp.ne.s32.totalorder %s446_s19, %s1844_s29  ;;  %p1853_p8 = scmp.lt.s32.totalorder %s1844_s29, %s1844_s29 }
  0x4b   : > { %p1847_p2 = pnand %p1845_p1, %p2082_p13  ;;  %p1854_p7 = por %p1853_p8, %p1852_p9 }
  0x4d   : > { %p1848_p4 = pneg %p1847_p2 }
  0x4f   : > { %p1855_p11 = pnand %p1854_p7, %p1848_p4 }
  0x51   : > { %1858 = shalt.err (!%p1855_p11)
}
  0x52   : > { %1627 = dma.hbm_to_vmem [thread:$0]  (!%p2076_p12), %s2297_s12, 1024, %s446_s19, [#allocation9], %s1936_s26, %s1936_s26, %s1937_s18  }
  0x53   : > { %471 = sbr.rel (%p2068_p10) target bundleno = 1369 (0x559), region = 76  ;;  %p2320_p13 = scmp.eq.s32.totalorder (!%p2068_p10), %s2040_s17, 0 }
  0x58   : > { %1902 = dma.done.wait (%p2320_p13), [#allocation3], 1024   ;;  %p2321_p0 = pmov %p2320_p13 }
  0x5a   : > { %1904 = vsyncadd (%p2321_p0), [#allocation3], 4294966272  ;;  %p2322_p3 = pmov %p2321_p0 }
  0x5b   : > { %p2323_p1 = pmov %p2321_p0 }
  0x5c   : > { %1906 = dma.done.wait (%p2322_p3), [#allocation6], 2048  }
  0x5d   : > { %1908 = vsyncadd (%p2323_p1), [#allocation6], 4294965248  ;;  %p2324_p2 = pmov %p2321_p0 }
  0x5e   : > { %p2325_p12 = pmov %p2321_p0 }
  0x5f   : > { %1910 = dma.done.wait (%p2324_p2), [#allocation9], 2048  }
  0x60   : > { %1912 = vsyncadd (%p2325_p12), [#allocation9], 4294965248  ;;  %vm550_vm0 = vcmask 1042432   ;;  %v1940_v0 = vmov 0.0   ;;  %p532_p10 = scmp.lt.s32.totalorder %s2040_s17, 1  ;;  %vm551_vm1 = vcmask 1043456  }
  0x61   : > { %1478 = vmatprep.subr.bf16.mxu0 %v1940_v0  ;;  %1484 = vmatprep.subr.bf16.mxu1 %v1940_v0  ;;  %v1941_v1 = vmov 65535   ;;  %vm1942_vm2 = vmmov 0   ;;  %v538_v4 = vld [vmem:[%s2286_s1] sm:$0xf]  ;;  %v1685_v6 = vld [vmem:[#allocation2 + $0x38] sm:$0xff]   ;;  %vm546_vm3 = vcmask 56320  }
  0x62   : > { %v552_v2 = vsel %vm550_vm0, 4294967295, %v1941_v1  ;;  %1480 = vmatprep.mubr.msk.bf16.mxu0 %vm1942_vm2, %v1940_v0  ;;  %1500 = vmatprep.mubr.msk.bf16.mxu1 %vm1942_vm2, %v1940_v0  ;;  %s533_s15 = scalar_select %p532_p10, %s2040_s17, 1  ;;  %v1686_v8 = vld [vmem:[#allocation2 + $0x30] sm:$0xff]   ;;  %v1687_v9 = vld [vmem:[#allocation2 + $0x28] sm:$0xff]   ;;  %v1688_v10 = vld [vmem:[#allocation2 + $0x20] sm:$0xff]  }
  0x63   : > { %v2158_v3 = vsel %vm551_vm1, %v552_v2, 0  ;;  %1485 = vmatpush3.bf16.msra.mxu1 %v1685_v6  ;;  %v1689_v11 = vld [vmem:[#allocation2 + $0x18] sm:$0xff]   ;;  %v1690_v12 = vld [vmem:[#allocation2 + $0x10] sm:$0xff]   ;;  %v1691_v13 = vld [vmem:[#allocation2 + $0x8] sm:$0xff]   ;;  %s529_s21 = sand.u32 1, %s1923_s30   ;;  %s1426_s22 = sshll.u32 %s2040_s17, 7 }
  0x64   : > { %s1376_s25 = sshll.u32 %s533_s15, 2  ;;  %v555_v5 = vand.u32 %v2158_v3, %v538_v4  ;;  %1486 = vmatprep.subr.bf16.mxu1 %v1940_v0  ;;  %v1692_v14 = vld [vmem:[#allocation2] sm:$0xff]   ;;  %v1693_v15 = vld [vmem:[#allocation5 + $0x38] sm:$0xff]   ;;  %v1694_v16 = vld [vmem:[#allocation5 + $0x30] sm:$0xff]   ;;  %s1375_s19 = sshll.u32 %s529_s21, 3 }
  0x65   : > { %s535_s18 = scalar_lea.vmem %s2285_s0, %s1376_s25  ;;  %v1695_v17 = vld [vmem:[#allocation5 + $0x28] sm:$0xff]   ;;  %v1696_v18 = vld [vmem:[#allocation5 + $0x20] sm:$0xff]   ;;  %v1697_v19 = vld [vmem:[#allocation5 + $0x18] sm:$0xff]   ;;  %s531_s24 = scalar_lea.vmem [#allocation11], %s1375_s19 }
  0x66   : > { %v2167_v7 = vld [vmem:[%s535_s18] sm:$0xf]  ;;  %1479 = vmatpush3.bf16.msra.mxu0 %v555_v5  ;;  %v1698_v20 = vld [vmem:[#allocation5 + $0x10] sm:$0xff]   ;;  %v1699_v29 = vld [vmem:[#allocation5 + $0x8] sm:$0xff]   ;;  %s1252_s29 = sshll.u32 %s531_s24, 4  ;;  %s2250_s15 = scalar_lea.hbm %s2299_s14, %s1426_s22  ;;  %s1253_s29 = int_to_ptr.vmem [resolvable:$true] %s1252_s29 }
  0x67   : > { %1504 = vmatprep.subr.bf16.mxu0 %v1940_v0  ;;  %1487 = vmatpush3.bf16.msra.mxu1 %v1686_v8  ;;  %v1377_v21 = vld [vmem:[%s2287_s2] ss:$0 sm:$0xff]  ;;  %v1701_v31 = vld [vmem:[#allocation7 + $0x38] sm:$0xff]   ;;  %v1702_v32 = vld [vmem:[#allocation7 + $0x30] sm:$0xff]   ;;  %s1239_s25 = scalar_lea.sflag [#allocation4], %s529_s21  ;;  %s1859_s28 = scalar_lea.vmem %s1253_s29, 128 }
  0x68   : > { %1488 = vmatprep.subr.bf16.mxu1 %v1940_v0  ;;  %v1700_v30 = vld [vmem:[#allocation5] sm:$0xff]   ;;  %v1703_v33 = vld [vmem:[#allocation7 + $0x28] sm:$0xff]   ;;  %v1705_v45 = vld [vmem:[#allocation7 + $0x18] sm:$0xff]   ;;  %p1860_p4 = scmp.ne.s32.totalorder %s1253_s29, %s1859_s28  ;;  %s1943_s26 = smov [#allocation11]  }
  0x69   : > { %1481 = vmatmul.mubr.msk.bf16.vlgmr.msra.gmra.mxu0 %vm546_vm3, %v2167_v7  ;;  %v1379_v34 = vld [vmem:[%s2289_s4] ss:$0 sm:$0xff]  ;;  %v1706_v46 = vld [vmem:[#allocation7 + $0x10] sm:$0xff]   ;;  %v1707_v47 = vld [vmem:[#allocation7 + $0x8] sm:$0xff]   ;;  %s1863_s17 = sshll.u32 %s1943_s26, 4  ;;  %s1864_s17 = int_to_ptr.vmem [resolvable:$false] %s1863_s17 }
  0x6a   : > { %1520 = vmatprep.mubr.msk.bf16.mxu0 %vm1942_vm2, %v1940_v0  ;;  %1505 = vmatpush3.bf16.msra.mxu0 %v1693_v15  ;;  %v831_v36 = vld [vmem:[%s2292_s7] sm:$0xf]  ;;  %v1709_v49 = vld [vmem:[#allocation8 + $0x38] sm:$0xff]   ;;  %v1710_v50 = vld [vmem:[#allocation8 + $0x30] sm:$0xff]   ;;  %p1861_p9 = pnand %p1860_p4, %p2057_p5  ;;  %s1865_s18 = scalar_lea.vmem %s1864_s17, 256 }
  0x6b   : > { %1489 = vmatpush3.bf16.msra.mxu1 %v1687_v9  ;;  %1506 = vmatprep.subr.bf16.mxu0 %v1940_v0  ;;  %v937_v40 = vand.u32 %v831_v36, %v2158_v3  ;;  %v1704_v44 = vld [vmem:[#allocation7 + $0x20] sm:$0xff]   ;;  %v1711_v51 = vld [vmem:[#allocation8 + $0x28] sm:$0xff]   ;;  %v1713_v53 = vld [vmem:[#allocation8 + $0x18] sm:$0xff]   ;;  %p1866_p7 = scmp.lt.s32.totalorder %s1253_s29, %s1864_s17  ;;  %p1867_p11 = scmp.lt.s32.totalorder %s1865_s18, %s1859_s28 }
  0x6c   : > { %1490 = vmatprep.subr.bf16.mxu1 %v1940_v0  ;;  %v1708_v48 = vld [vmem:[#allocation7] sm:$0xff]   ;;  %v1714_v54 = vld [vmem:[#allocation8 + $0x10] sm:$0xff]   ;;  %p1862_p8 = pneg %p1861_p9 }
  0x6d   : > { %v1712_v52 = vld [vmem:[#allocation8 + $0x20] sm:$0xff]   ;;  %p1868_p13 = por %p1867_p11, %p1866_p7 }
  0x6e   : > { %1507 = vmatpush3.bf16.msra.mxu0 %v1694_v16  ;;  %v1388_v55 = vld [vmem:[%s2291_s6] ss:$0 sm:$0xff]  ;;  %v1721_v16 = vld [vmem:[#allocation10 + $0x18] sm:$0xff]  }
  0x6f   : > { %1491 = vmatpush3.bf16.msra.mxu1 %v1688_v10  ;;  %1508 = vmatprep.subr.bf16.mxu0 %v1940_v0  ;;  %v1715_v10 = vld [vmem:[#allocation8 + $0x8] sm:$0xff]   ;;  %v1720_v15 = vld [vmem:[#allocation10 + $0x20] sm:$0xff]   ;;  %p1869_p0 = pnand %p1868_p13, %p1862_p8 }
  0x70   : > { %1492 = vmatprep.subr.bf16.mxu1 %v1940_v0 }
  0x72   : > { %1509 = vmatpush3.bf16.msra.mxu0 %v1695_v17  ;;  %v1722_v17 = vld [vmem:[#allocation10 + $0x10] sm:$0xff]  }
  0x73   : > { %1493 = vmatpush3.bf16.msra.mxu1 %v1689_v11  ;;  %1510 = vmatprep.subr.bf16.mxu0 %v1940_v0  ;;  %v1716_v11 = vld [vmem:[#allocation8] sm:$0xff]  }
  0x74   : > { %1494 = vmatprep.subr.bf16.mxu1 %v1940_v0 }
  0x76   : > { %1511 = vmatpush3.bf16.msra.mxu0 %v1696_v18 }
  0x77   : > { %1495 = vmatpush3.bf16.msra.mxu1 %v1690_v12  ;;  %1512 = vmatprep.subr.bf16.mxu0 %v1940_v0  ;;  %v1717_v12 = vld [vmem:[#allocation10 + $0x38] sm:$0xff]  }
  0x78   : > { %1496 = vmatprep.subr.bf16.mxu1 %v1940_v0 }
  0x7a   : > { %1513 = vmatpush3.bf16.msra.mxu0 %v1697_v19  ;;  %v1406_v19 = vld [vmem:[%s2294_s9] ss:$0 sm:$0xff] }
  0x7b   : > { %1497 = vmatpush3.bf16.msra.mxu1 %v1691_v13  ;;  %1514 = vmatprep.subr.bf16.mxu0 %v1940_v0  ;;  %v1718_v13 = vld [vmem:[#allocation10 + $0x30] sm:$0xff]  }
  0x7c   : > { %1498 = vmatprep.subr.bf16.mxu1 %v1940_v0 }
  0x7e   : > { %1515 = vmatpush3.bf16.msra.mxu0 %v1698_v20 }
  0x7f   : > { %1499 = vmatpush3.bf16.msra.mxu1 %v1692_v14  ;;  %1516 = vmatprep.subr.bf16.mxu0 %v1940_v0  ;;  %v1719_v14 = vld [vmem:[#allocation10 + $0x28] sm:$0xff]  }
  0x80   : > { %1524 = vmatprep.subr.bf16.mxu1 %v1940_v0 }
  0x82   : > { %1517 = vmatpush3.bf16.msra.mxu0 %v1699_v29  ;;  %v1407_v29 = vld [vmem:[%s2296_s11] ss:$0 sm:$0xff] }
  0x83   : > { %1518 = vmatprep.subr.bf16.mxu0 %v1940_v0 }
  0x86   : > { %1519 = vmatpush3.bf16.msra.mxu0 %v1700_v30 }
  0x87   : > { %1544 = vmatprep.subr.bf16.mxu0 %v1940_v0 }
 0x129   : > { %v591_v22 = vpop.f32.mrf.mxu0 }
 0x12a   : > { %v592_v23 = vadd.f32 %v1377_v21, %v591_v22 }
 0x12b   : > { %v1482_v24 = vpop.f32.mrf.mxu0 }
 0x12c   : > { %v597_v25 = vmax.f32 %v592_v23, 0.0 }
 0x12d   : > { %v594_v26 = vpop.f32.mrf.mxu0 }
 0x12e   : > { %v598_v27 = vpack.c.bf16 %v597_v25, %v597_v25 }
 0x12f   : > { %v1483_v28 = vpop.f32.mrf.mxu0 }
 0x130   : > { %1501 = vmatmul.mubr.bf16.vlgmr.msra.gmra.mxu1 %v598_v27  ;;  %v1723_v27 = vld [vmem:[#allocation10 + $0x8] sm:$0xff]   ;;  %v1724_v28 = vld [vmem:[#allocation10] sm:$0xff]  }
 0x131   : > { %1540 = vmatprep.mubr.msk.bf16.mxu1 %vm1942_vm2, %v1940_v0  ;;  %1525 = vmatpush3.bf16.msra.mxu1 %v1701_v31 }
 0x132   : > { %1526 = vmatprep.subr.bf16.mxu1 %v1940_v0 }
 0x135   : > { %1527 = vmatpush3.bf16.msra.mxu1 %v1702_v32 }
 0x136   : > { %1528 = vmatprep.subr.bf16.mxu1 %v1940_v0 }
 0x139   : > { %1529 = vmatpush3.bf16.msra.mxu1 %v1703_v33 }
 0x13a   : > { %1530 = vmatprep.subr.bf16.mxu1 %v1940_v0 }
 0x13d   : > { %1531 = vmatpush3.bf16.msra.mxu1 %v1704_v44 }
 0x13e   : > { %1532 = vmatprep.subr.bf16.mxu1 %v1940_v0 }
 0x141   : > { %1533 = vmatpush3.bf16.msra.mxu1 %v1705_v45 }
 0x142   : > { %1534 = vmatprep.subr.bf16.mxu1 %v1940_v0 }
 0x145   : > { %1535 = vmatpush3.bf16.msra.mxu1 %v1706_v46 }
 0x146   : > { %1536 = vmatprep.subr.bf16.mxu1 %v1940_v0 }
 0x149   : > { %1537 = vmatpush3.bf16.msra.mxu1 %v1707_v47 }
 0x14a   : > { %1538 = vmatprep.subr.bf16.mxu1 %v1940_v0 }
 0x14d   : > { %1539 = vmatpush3.bf16.msra.mxu1 %v1708_v48 }
 0x14e   : > { %1570 = vmatprep.subr.bf16.mxu1 %v1940_v0 }
 0x1f0   : > { %v704_v35 = vpop.f32.mrf.mxu1 }
 0x1f1   : > { %v705_v37 = vadd.f32 %v1379_v34, %v704_v35 }
 0x1f2   : > { %v1502_v38 = vpop.f32.mrf.mxu1 }
 0x1f3   : > { %v710_v39 = vmax.f32 %v705_v37, 0.0  ;;  %v1416_v37 = vld [vmem:[%s2298_s13] ss:$0 sm:$0xff] }
 0x1f4   : > { %v707_v41 = vpop.f32.mrf.mxu1 }
 0x1f5   : > { %v711_v42 = vpack.c.bf16 %v710_v39, %v710_v39 }
 0x1f6   : > { %v1503_v43 = vpop.f32.mrf.mxu1 }
 0x1f7   : > { %1521 = vmatmul.mubr.bf16.vlgmr.msra.gmra.mxu0 %v711_v42 }
 0x1f8   : > { %1545 = vmatpush3.bf16.msra.mxu0 %v937_v40  ;;  %1546 = vmatprep.mubr.msk.bf16.mxu0 %vm1942_vm2, %v1940_v0 }
 0x1f9   : > { %1550 = vmatprep.subr.bf16.mxu0 %v1940_v0 }
 0x1ff   : > { %1547 = vmatmul.mubr.msk.bf16.vlgmr.msra.gmra.mxu0 %vm546_vm3, %v2167_v7 }
 0x200   : > { %1566 = vmatprep.mubr.msk.bf16.mxu0 %vm1942_vm2, %v1940_v0  ;;  %1551 = vmatpush3.bf16.msra.mxu0 %v1709_v49 }
 0x201   : > { %1552 = vmatprep.subr.bf16.mxu0 %v1940_v0 }
 0x204   : > { %1553 = vmatpush3.bf16.msra.mxu0 %v1710_v50 }
 0x205   : > { %1554 = vmatprep.subr.bf16.mxu0 %v1940_v0 }
 0x208   : > { %1555 = vmatpush3.bf16.msra.mxu0 %v1711_v51  ;;  %v1233_v51 = vlaneseq }
 0x209   : > { %1556 = vmatprep.subr.bf16.mxu0 %v1940_v0 }
 0x20c   : > { %1557 = vmatpush3.bf16.msra.mxu0 %v1712_v52 }
 0x20d   : > { %1558 = vmatprep.subr.bf16.mxu0 %v1940_v0 }
 0x210   : > { %1559 = vmatpush3.bf16.msra.mxu0 %v1713_v53 }
 0x211   : > { %1560 = vmatprep.subr.bf16.mxu0 %v1940_v0 }
 0x214   : > { %1561 = vmatpush3.bf16.msra.mxu0 %v1714_v54 }
 0x215   : > { %1562 = vmatprep.subr.bf16.mxu0 %v1940_v0 }
 0x218   : > { %1563 = vmatpush3.bf16.msra.mxu0 %v1715_v10 }
 0x219   : > { %1564 = vmatprep.subr.bf16.mxu0 %v1940_v0 }
 0x21c   : > { %1565 = vmatpush3.bf16.msra.mxu0 %v1716_v11 }
 0x2b7   : > { %v817_v56 = vpop.f32.mrf.mxu0 }
 0x2b8   : > { %v818_v57 = vadd.f32 %v1388_v55, %v817_v56 }
 0x2b9   : > { %v1522_v58 = vpop.f32.mrf.mxu0 }
 0x2ba   : > { %v823_v59 = vrot.slane %v818_v57, 4 }
 0x2bb   : > { %v820_v60 = vpop.f32.mrf.mxu0 }
 0x2bc   : > { %v824_v61 = vadd.f32 %v823_v59, %v818_v57  ;;  %v1234_v57 = vand.u32 127, %v1233_v51 }
 0x2bd   : > { %v1523_v62 = vpop.f32.mrf.mxu0 }
 0x2be   : > { %v825_v63 = vrot.slane %v824_v61, 2  ;;  %vm1235_vm6 = vcmp.lt.s32.totalorder %v1234_v57, 3 }
 0x2bf   : > { %v973_v1 = vpop.f32.mrf.mxu0 }
 0x2c0   : > { %v826_v2 = vadd.f32 %v825_v63, %v824_v61 }
 0x2c1   : > { %v1548_v3 = vpop.f32.mrf.mxu0 }
 0x2c2   : > { %v827_v4 = vrot.slane %v826_v2, 1 }
 0x2c3   : > { %v976_v5 = vpop.f32.mrf.mxu0 }
 0x2c4   : > { %v828_v6 = vadd.f32 %v827_v4, %v826_v2 }
 0x2c5   : > { %v1549_v7 = vpop.f32.mrf.mxu0 }
 0x2c6   : > { %v829_v8 = vmul.f32 0.125, %v828_v6 }
 0x2c8   : > { %v830_v9 = vpack.c.bf16 %v829_v8, %v829_v8 }
 0x2ca   : > { %1541 = vmatmul.mubr.bf16.vlgmr.msra.gmra.mxu1 %v830_v9 }
 0x2cb   : > { %1586 = vmatprep.mubr.msk.bf16.mxu1 %vm1942_vm2, %v1940_v0  ;;  %1571 = vmatpush3.bf16.msra.mxu1 %v1717_v12 }
 0x2cc   : > { %1572 = vmatprep.subr.bf16.mxu1 %v1940_v0 }
 0x2cf   : > { %1573 = vmatpush3.bf16.msra.mxu1 %v1718_v13 }
 0x2d0   : > { %1574 = vmatprep.subr.bf16.mxu1 %v1940_v0 }
 0x2d3   : > { %1575 = vmatpush3.bf16.msra.mxu1 %v1719_v14 }
 0x2d4   : > { %1576 = vmatprep.subr.bf16.mxu1 %v1940_v0 }
 0x2d7   : > { %1577 = vmatpush3.bf16.msra.mxu1 %v1720_v15 }
 0x2d8   : > { %1578 = vmatprep.subr.bf16.mxu1 %v1940_v0 }
 0x2db   : > { %1579 = vmatpush3.bf16.msra.mxu1 %v1721_v16 }
 0x2dc   : > { %1580 = vmatprep.subr.bf16.mxu1 %v1940_v0 }
 0x2df   : > { %1581 = vmatpush3.bf16.msra.mxu1 %v1722_v17 }
 0x2e0   : > { %1582 = vmatprep.subr.bf16.mxu1 %v1940_v0 }
 0x2e3   : > { %1583 = vmatpush3.bf16.msra.mxu1 %v1723_v27 }
 0x2e4   : > { %1584 = vmatprep.subr.bf16.mxu1 %v1940_v0 }
 0x2e7   : > { %1585 = vmatpush3.bf16.msra.mxu1 %v1724_v28 }
 0x38a   : > { %v930_v18 = vpop.f32.mrf.mxu1 }
 0x38b   : > { %v974_v20 = vadd.f32 %v973_v1, %v930_v18 }
 0x38c   : > { %v1542_v21 = vpop.f32.mrf.mxu1 }
 0x38d   : > { %v986_v22 = vadd.f32 %v1406_v19, %v974_v20 }
 0x38e   : > { %v933_v23 = vpop.f32.mrf.mxu1 }
 0x38f   : > { %v987_v24 = vmax.f32 %v986_v22, 0.0 }
 0x390   : > { %v1543_v25 = vpop.f32.mrf.mxu1 }
 0x391   : > { %v988_v26 = vpack.c.bf16 %v987_v24, %v987_v24 }
 0x393   : > { %1567 = vmatmul.mubr.bf16.vlgmr.msra.gmra.mxu0 %v988_v26 }
 0x453   : > { %v1094_v30 = vpop.f32.mrf.mxu0 }
 0x454   : > { %v1095_v31 = vadd.f32 %v1407_v29, %v1094_v30 }
 0x455   : > { %v1568_v32 = vpop.f32.mrf.mxu0 }
 0x456   : > { %v1100_v33 = vmax.f32 %v1095_v31, 0.0 }
 0x457   : > { %v1097_v34 = vpop.f32.mrf.mxu0 }
 0x458   : > { %v1101_v35 = vpack.c.bf16 %v1100_v33, %v1100_v33 }
 0x459   : > { %v1569_v36 = vpop.f32.mrf.mxu0 }
 0x45a   : > { %1587 = vmatmul.mubr.bf16.vlgmr.msra.gmra.mxu1 %v1101_v35 }
 0x51a   : > { %v1207_v0 = vpop.f32.mrf.mxu1 }
 0x51b   : > { %v1208_v38 = vadd.f32 %v1416_v37, %v1207_v0 }
 0x51c   : > { %v1588_v39 = vpop.f32.mrf.mxu1 }
 0x51d   : > { %v1216_v40 = vand.u32 2147483647, %v1208_v38  ;;  %v1213_v54 = vmax.f32 %v1208_v38, 0.0  ;;  %vm1214_vm5 = vcmp.ne.f32.partialorder %v1208_v38, %v1208_v38 }
 0x51e   : > { %v1210_v41 = vpop.f32.mrf.mxu1 }
 0x51f   : > { %v1217_v42 = vsub.f32 0.0, %v1216_v40 }
 0x520   : > { %v1589_v43 = vpop.f32.mrf.mxu1 }
 0x521   : > { %v1218_v44 = vmul.f32 1.442695, %v1217_v42 }
 0x523   : > { %1725 = vpow2.f32 %v1218_v44 }
 0x530   : > { %v1726_v45 = vpop.eup %1725 }
 0x531   : > { %v1220_v46 = vadd.f32 1.0, %v1726_v45  ;;  %v1223_v47 = vmul.f32 -0.5, %v1726_v45  ;;  %v1226_v49 = vand.u32 2147483647, %v1726_v45 }
 0x533   : > { %1727 = vlog2.f32 %v1220_v46  ;;  %v1224_v48 = vadd.f32 1.0, %v1223_v47  ;;  %vm1227_vm4 = vcmp.lt.f32.partialorder %v1226_v49, 0.0004427343 }
 0x535   : > { %v1225_v53 = vmul.f32 %v1726_v45, %v1224_v48 }
 0x540   : > { %v1728_v50 = vpop.eup %1727 }
 0x541   : > { %v1222_v52 = vmul.f32 0.6931472, %v1728_v50 }
 0x543   : > { %v1228_v55 = vsel %vm1227_vm4, %v1225_v53, %v1222_v52 }
 0x544   : > { %v1229_v56 = vadd.f32 %v1228_v55, %v1213_v54 }
 0x546   : > { %v1230_v58 = vsel %vm1214_vm5, %v1208_v38, %v1229_v56 }
 0x547   : > { %v1231_v59 = vmul.f32 0.9, %v1230_v58 }
 0x549   : > { %v1232_v60 = vadd.f32 0.1, %v1231_v59 }
 0x54b   : > { %v1236_v61 = vsel %vm1235_vm6, %v1208_v38, %v1232_v60 }
 0x54c   : > { %1237 = vst [vmem:[%s531_s24] sm:$0xff] %v1236_v61 }
 0x54d   : > { %1872 = shalt.err (!%p1869_p0)
}
 0x54e   : > { %s1873_s27 = scalar_lea.hbm %s2250_s15, 128  ;;  %s1877_s19 = scalar_lea.hbm %s2299_s14, 256 }
 0x54f   : > { %p1874_p3 = scmp.ne.s32.totalorder %s2250_s15, %s1873_s27  ;;  %p1878_p12 = scmp.lt.s32.totalorder %s2250_s15, %s2299_s14 }
 0x550   : > { %p1879_p10 = scmp.lt.s32.totalorder %s1877_s19, %s1873_s27 }
 0x551   : > { %p1875_p1 = pnand %p1874_p3, %p2057_p5 }
 0x552   : > { %p1880_p4 = por %p1879_p10, %p1878_p12 }
 0x553   : > { %p1876_p2 = pneg %p1875_p1 }
 0x555   : > { %p1881_p9 = pnand %p1880_p4, %p1876_p2 }
 0x557   : > { %1884 = shalt.err (!%p1881_p9)
}
 0x558   : > { %1610 = dma.vmem_to_hbm [thread:$0]  (%p2057_p5), %s1253_s29, 128, %s2250_s15, %s1239_s25  }
 0x559 PF: > { %s2326_s5 = sld [smem:[#allocation18_spill]] }
 0x55a   : > { %s2327_s16 = sld [smem:[#allocation16_spill]] }
 0x55f   : > { %p1642_p8 = scmp.ge.s32.totalorder %s2326_s5, 2 }
 0x560   : > { %s1264_s26 = sand.u32 1, %s2327_s16  }
 0x561   : > { %p1629_p7 = pnand %p1642_p8, %p2061_p6  ;;  %s1265_s17 = scalar_lea.sflag [#allocation4], %s1264_s26 }
 0x563   : > { %p1630_p11 = pneg %p1629_p7 }
 0x565   : > { %1914 = dma.done.wait (%p1630_p11), %s1265_s17, 128  }
 0x566   : > { %1916 = vsyncadd (%p1630_p11), %s1265_s17, 4294967168  ;;  %s2329_s16 = sld [smem:[#allocation19_spill]]  ;;  %s2332_s29 = smov %s1923_s30 }
 0x567   : > { %s2330_s18 = sld [smem:[#allocation17_spill]] }
 0x568   : > { %s2331_s15 = sld [smem:[#allocation20_spill]] }
 0x56c   : > { %p27_p13 = scmp.ge.s32.totalorder %s2329_s16, 4  }
 0x56d   : > { %s2333_s30 = smov %s2330_s18 }
 0x56e   :  { %29 = sbr.rel (!%p27_p13) target bundleno = 8 (0x8), region = 132 }
 0x573   :  { %1270 = vsyncpa [#allocation3], 1 }
 0x574   :  { %1272 = vsyncpa [#allocation3 + $0x1], 1 }
 0x575   :  { %1273 = vsyncpa [#allocation6], 1 }
 0x576   :  { %1274 = vsyncpa [#allocation9], 1 }
 0x577   :  { %1275 = vsyncpa [#allocation4], 1 }
 0x578   :  { %1277 = vsyncpa [#allocation4 + $0x1], 1 }

// kernel: tpu_custom_call.1
= control target key start
LH: loop header
LB: loop body
LE: loop exit
PB: predicated region body
PF: predicated region fallthrough
CT: control target
= control target key end

     0   :  { %s2285_s0 = inlined_call_operand.vmem [shape: bf16[2,8,7], index: 0, kind: input, shape index: {}]   ;;  %s2286_s1 = inlined_call_operand.vmem [shape: bf16[7,128], index: 1, kind: input, shape index: {}]   ;;  %s2287_s2 = inlined_call_operand.vmem [shape: f32[1,128], index: 2, kind: input, shape index: {}]   ;;  %s2288_s3 = inlined_call_operand.hbm [shape: bf16[128,128], index: 3, kind: input, shape index: {}]   ;;  %s2289_s4 = inlined_call_operand.vmem [shape: f32[1,128], index: 4, kind: input, shape index: {}]   ;;  %s2290_s5 = inlined_call_operand.hbm [shape: bf16[128,128], index: 5, kind: input, shape index: {}]   ;;  %s2291_s6 = inlined_call_operand.vmem [shape: f32[1,128], index: 6, kind: input, shape index: {}]   ;;  %s2292_s7 = inlined_call_operand.vmem [shape: bf16[7,128], index: 7, kind: input, shape index: {}]   ;;  %s2293_s8 = inlined_call_operand.hbm [shape: bf16[128,128], index: 8, kind: input, shape index: {}]   ;;  %s2294_s9 = inlined_call_operand.vmem [shape: f32[1,128], index: 9, kind: input, shape index: {}]   ;;  %s2295_s10 = inlined_call_operand.hbm [shape: bf16[128,128], index: 10, kind: input, shape index: {}]   ;;  %s2296_s11 = inlined_call_operand.vmem [shape: f32[1,128], index: 11, kind: input, shape index: {}]   ;;  %s2297_s12 = inlined_call_operand.hbm [shape: bf16[128,128], index: 12, kind: input, shape index: {}]   ;;  %s2298_s13 = inlined_call_operand.vmem [shape: f32[1,128], index: 13, kind: input, shape index: {}]   ;;  %s2299_s14 = inlined_call_operand.hbm [shape: f32[2,8,128], index: 14, kind: output, shape index: {}]  }
   0x1   :  { %2307 = sst [smem:[#allocation22_spill]] %s2290_s5 }
   0x2   :  { %19 = vsyncpa [#allocation3], 0 }
   0x3   :  { %20 = vsyncpa [#allocation6], 0 }
   0x4   :  { %21 = vsyncpa [#allocation9], 0 }
   0x5   :  { %22 = vsyncpa [#allocation4], 0 }
   0x6   :  { %24 = vsyncpa [#allocation4 + $0x1], 0  ;;  %s2019_s29 = smov 0   ;;  %s2021_s30 = smov 0  }
   0x7   :  { %s2023_s15 = smov 0   ;;  %s2025_s16 = smov 0  }
   0x8 LB: > { %2308 = sst [smem:[#allocation16_spill]] %s1919_s29  ;;  %s2040_s17 = sadd.s32 4294967295, %s1931_s16   ;;  %s1931_s16 = sphi %s2025_s16, %s2329_s16   ;;  %s1927_s15 = sphi %s2023_s15, %s2331_s15   ;;  %s1923_s30 = sphi %s2021_s30, %s2333_s30   ;;  %s1919_s29 = sphi %s2019_s29, %s2332_s29  }
   0x9   : > { %2309 = sst [smem:[#allocation17_spill]] %s1927_s15  ;;  %s1361_s18 = sadd.s32 4294967294, %s1931_s16  }
   0xa   : > { %2310 = sst [smem:[#allocation18_spill]] %s1931_s16  ;;  %s2044_s19 = sadd.s32 1, %s1931_s16  }
   0xb   : > { %2311 = sst [smem:[#allocation19_spill]] %s2044_s19  ;;  %s336_s20 = sadd.s32 1, %s1927_s15 }
   0xc   : > { %s333_s21 = ssub.s32 %s1931_s16, %s2044_s19  ;;  %p346_p0 = scmp.ne.s32.totalorder %s1927_s15, %s1923_s30 }
   0xd   : > { %p334_p1 = scmp.eq.s32.totalorder %s333_s21, 0  ;;  %p347_p2 = scmp.eq.s32.totalorder %s2040_s17, 1 }
   0xe   : > { %p352_p3 = scmp.ne.s32.totalorder %s1923_s30, %s1919_s29  ;;  %p353_p4 = scmp.eq.s32.totalorder %s1361_s18, 1 }
   0xf   : > { %s2055_s22 = scalar_select %p334_p1, %s1927_s15, %s336_s20  }
  0x10   : > { %p2057_p5 = por %p347_p2, %p346_p0  ;;  %p2061_p6 = por %p353_p4, %p352_p3 }
  0x11   : > { %2312 = sst [smem:[#allocation20_spill]] %s2055_s22  ;;  %p1362_p7 = scmp.ge.s32.totalorder %s1931_s16, 1 }
  0x12   : > { %s2314_s24 = scalar_select %p2061_p6, 1, 0 }
  0x13   : > { %p360_p8 = scmp.lt.s32.totalorder %s1931_s16, 3  ;;  %p2306_p9 = scmp.eq.s32.totalorder %s2040_s17, 0 }
  0x14   : > { %2315 = sst [smem:[#allocation21_spill]] %s2314_s24  ;;  %s1933_s26 = smov [#allocation5]  }
  0x15   : > { %p2068_p10 = pnand %p1362_p7, %p360_p8  ;;  %s394_s27 = sshll.u32 %s1933_s26, 4  ;;  %s395_s27 = int_to_ptr.vmem [resolvable:$true] %s394_s27 }
  0x16   : > { %s1934_s18 = smov [#allocation8]   ;;  %s1935_s21 = smov [#allocation2]  }
  0x17   : > { %p1612_p11 = pneg %p2068_p10  ;;  %s429_s20 = sshll.u32 %s1934_s18, 4  ;;  %s430_s20 = int_to_ptr.vmem [resolvable:$true] %s429_s20 }
  0x18   : > { %s378_s22 = sshll.u32 %s1935_s21, 4  ;;  %s1740_s19 = scalar_lea.vmem %s395_s27, 1024  ;;  %s379_s22 = int_to_ptr.vmem [resolvable:$true] %s378_s22 }
  0x19   : > { %p2076_p12 = pnand %p2306_p9, %p1612_p11  ;;  %p1741_p0 = scmp.ne.s32.totalorder %s395_s27, %s1740_s19 }
  0x1a   : > { %p1748_p3 = scmp.lt.s32.totalorder %s395_s27, %s395_s27  ;;  %p1749_p4 = scmp.lt.s32.totalorder %s1740_s19, %s1740_s19 }
  0x1b   : > { %p2082_p13 = pneg %p2076_p12 }
  0x1c   : > { %p1750_p7 = por %p1749_p4, %p1748_p3 }
  0x1d   : > { %p1743_p1 = pnand %p1741_p0, %p2082_p13 }
  0x1f   : > { %p1744_p2 = pneg %p1743_p1 }
  0x21   : > { %p1751_p8 = pnand %p1750_p7, %p1744_p2 }
  0x23   : > { %1754 = shalt.err (!%p1751_p8)
}
  0x24   : > { %s1936_s26 = smov 64   ;;  %s1937_s18 = smov 4  }
  0x25   : > { %s2319_s5 = sld [smem:[#allocation22_spill]]  ;;  %s1766_s29 = scalar_lea.vmem %s430_s20, 1024 }
  0x26   : > { %p1767_p11 = scmp.ne.s32.totalorder %s430_s20, %s1766_s29  ;;  %p1774_p3 = scmp.lt.s32.totalorder %s430_s20, %s430_s20 }
  0x27   : > { %p1775_p2 = scmp.lt.s32.totalorder %s1766_s29, %s1766_s29 }
  0x28   : > { %p1769_p0 = pnand %p1767_p11, %p2082_p13 }
  0x29   : > { %p1776_p4 = por %p1775_p2, %p1774_p3 }
  0x2a   : > { %p1770_p1 = pneg %p1769_p0 }
  0x2b   : > { %1618 = dma.hbm_to_vmem [thread:$0]  (!%p2076_p12), %s2319_s5, 1024, %s395_s27, [#allocation6], %s1936_s26, %s1936_s26, %s1937_s18  }
  0x2c   : > { %p1777_p7 = pnand %p1776_p4, %p1770_p1 }
  0x2e   : > { %1780 = shalt.err (!%p1777_p7)
}
  0x2f   : > { %1624 = dma.hbm_to_vmem [thread:$0]  (!%p2076_p12), %s2295_s10, 1024, %s430_s20, [#allocation9], %s1936_s26, %s1936_s26, %s1937_s18  }
  0x30   : > { %s1792_s24 = scalar_lea.vmem %s379_s22, 1024  ;;  %p1800_p9 = scmp.lt.s32.totalorder %s379_s22, %s379_s22 }
  0x31   : > { %p1793_p8 = scmp.ne.s32.totalorder %s379_s22, %s1792_s24  ;;  %p1801_p3 = scmp.lt.s32.totalorder %s1792_s24, %s1792_s24 }
  0x33   : > { %p1795_p11 = pnand %p1793_p8, %p2082_p13  ;;  %p1802_p1 = por %p1801_p3, %p1800_p9 }
  0x35   : > { %p1796_p0 = pneg %p1795_p11 }
  0x37   : > { %p1803_p2 = pnand %p1802_p1, %p1796_p0 }
  0x39   : > { %1806 = shalt.err (!%p1803_p2)
}
  0x3a   : > { %1615 = dma.hbm_to_vmem [thread:$0]  (!%p2076_p12), %s2288_s3, 1024, %s379_s22, [#allocation3], %s1936_s26, %s1936_s26, %s1937_s18  }
  0x3b   : > { %s1938_s27 = smov [#allocation7]   ;;  %s1939_s21 = smov [#allocation10]  }
  0x3c   : > { %s413_s20 = sshll.u32 %s1938_s27, 4  ;;  %s445_s19 = sshll.u32 %s1939_s21, 4  ;;  %s414_s20 = int_to_ptr.vmem [resolvable:$true] %s413_s20  ;;  %s446_s19 = int_to_ptr.vmem [resolvable:$true] %s445_s19 }
  0x3d   : > { %s1818_s5 = scalar_lea.vmem %s414_s20, 1024  ;;  %p1826_p8 = scmp.lt.s32.totalorder %s414_s20, %s414_s20 }
  0x3e   : > { %p1819_p4 = scmp.ne.s32.totalorder %s414_s20, %s1818_s5  ;;  %p1827_p11 = scmp.lt.s32.totalorder %s1818_s5, %s1818_s5 }
  0x40   : > { %p1821_p9 = pnand %p1819_p4, %p2082_p13  ;;  %p1828_p0 = por %p1827_p11, %p1826_p8 }
  0x42   : > { %p1822_p7 = pneg %p1821_p9 }
  0x44   : > { %p1829_p3 = pnand %p1828_p0, %p1822_p7 }
  0x46   : > { %1832 = shalt.err (!%p1829_p3)
}
  0x47   : > { %1621 = dma.hbm_to_vmem [thread:$0]  (!%p2076_p12), %s2293_s8, 1024, %s414_s20, [#allocation6], %s1936_s26, %s1936_s26, %s1937_s18  }
  0x48   : > { %s1844_s29 = scalar_lea.vmem %s446_s19, 1024  ;;  %p1852_p9 = scmp.lt.s32.totalorder %s446_s19, %s446_s19 }
  0x49   : > { %p1845_p1 = scmp.ne.s32.totalorder %s446_s19, %s1844_s29  ;;  %p1853_p8 = scmp.lt.s32.totalorder %s1844_s29, %s1844_s29 }
  0x4b   : > { %p1847_p2 = pnand %p1845_p1, %p2082_p13  ;;  %p1854_p7 = por %p1853_p8, %p1852_p9 }
  0x4d   : > { %p1848_p4 = pneg %p1847_p2 }
  0x4f   : > { %p1855_p11 = pnand %p1854_p7, %p1848_p4 }
  0x51   : > { %1858 = shalt.err (!%p1855_p11)
}
  0x52   : > { %1627 = dma.hbm_to_vmem [thread:$0]  (!%p2076_p12), %s2297_s12, 1024, %s446_s19, [#allocation9], %s1936_s26, %s1936_s26, %s1937_s18  }
  0x53   : > { %471 = sbr.rel (%p2068_p10) target bundleno = 1369 (0x559), region = 76  ;;  %p2320_p13 = scmp.eq.s32.totalorder (!%p2068_p10), %s2040_s17, 0 }
  0x58   : > { %1902 = dma.done.wait (%p2320_p13), [#allocation3], 1024   ;;  %p2321_p0 = pmov %p2320_p13 }
  0x5a   : > { %1904 = vsyncadd (%p2321_p0), [#allocation3], 4294966272  ;;  %p2322_p3 = pmov %p2321_p0 }
  0x5b   : > { %p2323_p1 = pmov %p2321_p0 }
  0x5c   : > { %1906 = dma.done.wait (%p2322_p3), [#allocation6], 2048  }
  0x5d   : > { %1908 = vsyncadd (%p2323_p1), [#allocation6], 4294965248  ;;  %p2324_p2 = pmov %p2321_p0 }
  0x5e   : > { %p2325_p12 = pmov %p2321_p0 }
  0x5f   : > { %1910 = dma.done.wait (%p2324_p2), [#allocation9], 2048  }
  0x60   : > { %1912 = vsyncadd (%p2325_p12), [#allocation9], 4294965248  ;;  %vm550_vm0 = vcmask 1042432   ;;  %v1940_v0 = vmov 0.0   ;;  %p532_p10 = scmp.lt.s32.totalorder %s2040_s17, 1  ;;  %vm551_vm1 = vcmask 1043456  }
  0x61   : > { %1478 = vmatprep.subr.bf16.mxu0 %v1940_v0  ;;  %1484 = vmatprep.subr.bf16.mxu1 %v1940_v0  ;;  %v1941_v1 = vmov 65535   ;;  %vm1942_vm2 = vmmov 0   ;;  %v538_v4 = vld [vmem:[%s2286_s1] sm:$0xf]  ;;  %v1685_v6 = vld [vmem:[#allocation2 + $0x38] sm:$0xff]   ;;  %vm546_vm3 = vcmask 56320  }
  0x62   : > { %v552_v2 = vsel %vm550_vm0, 4294967295, %v1941_v1  ;;  %1480 = vmatprep.mubr.msk.bf16.mxu0 %vm1942_vm2, %v1940_v0  ;;  %1500 = vmatprep.mubr.msk.bf16.mxu1 %vm1942_vm2, %v1940_v0  ;;  %s533_s15 = scalar_select %p532_p10, %s2040_s17, 1  ;;  %v1686_v8 = vld [vmem:[#allocation2 + $0x30] sm:$0xff]   ;;  %v1687_v9 = vld [vmem:[#allocation2 + $0x28] sm:$0xff]   ;;  %v1688_v10 = vld [vmem:[#allocation2 + $0x20] sm:$0xff]  }
  0x63   : > { %v2158_v3 = vsel %vm551_vm1, %v552_v2, 0  ;;  %1485 = vmatpush3.bf16.msra.mxu1 %v1685_v6  ;;  %v1689_v11 = vld [vmem:[#allocation2 + $0x18] sm:$0xff]   ;;  %v1690_v12 = vld [vmem:[#allocation2 + $0x10] sm:$0xff]   ;;  %v1691_v13 = vld [vmem:[#allocation2 + $0x8] sm:$0xff]   ;;  %s529_s21 = sand.u32 1, %s1923_s30   ;;  %s1426_s22 = sshll.u32 %s2040_s17, 7 }
  0x64   : > { %s1376_s25 = sshll.u32 %s533_s15, 2  ;;  %v555_v5 = vand.u32 %v2158_v3, %v538_v4  ;;  %1486 = vmatprep.subr.bf16.mxu1 %v1940_v0  ;;  %v1692_v14 = vld [vmem:[#allocation2] sm:$0xff]   ;;  %v1693_v15 = vld [vmem:[#allocation5 + $0x38] sm:$0xff]   ;;  %v1694_v16 = vld [vmem:[#allocation5 + $0x30] sm:$0xff]   ;;  %s1375_s19 = sshll.u32 %s529_s21, 3 }
  0x65   : > { %s535_s18 = scalar_lea.vmem %s2285_s0, %s1376_s25  ;;  %v1695_v17 = vld [vmem:[#allocation5 + $0x28] sm:$0xff]   ;;  %v1696_v18 = vld [vmem:[#allocation5 + $0x20] sm:$0xff]   ;;  %v1697_v19 = vld [vmem:[#allocation5 + $0x18] sm:$0xff]   ;;  %s531_s24 = scalar_lea.vmem [#allocation11], %s1375_s19 }
  0x66   : > { %v2167_v7 = vld [vmem:[%s535_s18] sm:$0xf]  ;;  %1479 = vmatpush3.bf16.msra.mxu0 %v555_v5  ;;  %v1698_v20 = vld [vmem:[#allocation5 + $0x10] sm:$0xff]   ;;  %v1699_v29 = vld [vmem:[#allocation5 + $0x8] sm:$0xff]   ;;  %s1252_s29 = sshll.u32 %s531_s24, 4  ;;  %s2250_s15 = scalar_lea.hbm %s2299_s14, %s1426_s22  ;;  %s1253_s29 = int_to_ptr.vmem [resolvable:$true] %s1252_s29 }
  0x67   : > { %1504 = vmatprep.subr.bf16.mxu0 %v1940_v0  ;;  %1487 = vmatpush3.bf16.msra.mxu1 %v1686_v8  ;;  %v1377_v21 = vld [vmem:[%s2287_s2] ss:$0 sm:$0xff]  ;;  %v1701_v31 = vld [vmem:[#allocation7 + $0x38] sm:$0xff]   ;;  %v1702_v32 = vld [vmem:[#allocation7 + $0x30] sm:$0xff]   ;;  %s1239_s25 = scalar_lea.sflag [#allocation4], %s529_s21  ;;  %s1859_s28 = scalar_lea.vmem %s1253_s29, 128 }
  0x68   : > { %1488 = vmatprep.subr.bf16.mxu1 %v1940_v0  ;;  %v1700_v30 = vld [vmem:[#allocation5] sm:$0xff]   ;;  %v1703_v33 = vld [vmem:[#allocation7 + $0x28] sm:$0xff]   ;;  %v1705_v45 = vld [vmem:[#allocation7 + $0x18] sm:$0xff]   ;;  %p1860_p4 = scmp.ne.s32.totalorder %s1253_s29, %s1859_s28  ;;  %s1943_s26 = smov [#allocation11]  }
  0x69   : > { %1481 = vmatmul.mubr.msk.bf16.vlgmr.msra.gmra.mxu0 %vm546_vm3, %v2167_v7  ;;  %v1379_v34 = vld [vmem:[%s2289_s4] ss:$0 sm:$0xff]  ;;  %v1706_v46 = vld [vmem:[#allocation7 + $0x10] sm:$0xff]   ;;  %v1707_v47 = vld [vmem:[#allocation7 + $0x8] sm:$0xff]   ;;  %s1863_s17 = sshll.u32 %s1943_s26, 4  ;;  %s1864_s17 = int_to_ptr.vmem [resolvable:$false] %s1863_s17 }
  0x6a   : > { %1520 = vmatprep.mubr.msk.bf16.mxu0 %vm1942_vm2, %v1940_v0  ;;  %1505 = vmatpush3.bf16.msra.mxu0 %v1693_v15  ;;  %v831_v36 = vld [vmem:[%s2292_s7] sm:$0xf]  ;;  %v1709_v49 = vld [vmem:[#allocation8 + $0x38] sm:$0xff]   ;;  %v1710_v50 = vld [vmem:[#allocation8 + $0x30] sm:$0xff]   ;;  %p1861_p9 = pnand %p1860_p4, %p2057_p5  ;;  %s1865_s18 = scalar_lea.vmem %s1864_s17, 256 }
  0x6b   : > { %1489 = vmatpush3.bf16.msra.mxu1 %v1687_v9  ;;  %1506 = vmatprep.subr.bf16.mxu0 %v1940_v0  ;;  %v937_v40 = vand.u32 %v831_v36, %v2158_v3  ;;  %v1704_v44 = vld [vmem:[#allocation7 + $0x20] sm:$0xff]   ;;  %v1711_v51 = vld [vmem:[#allocation8 + $0x28] sm:$0xff]   ;;  %v1713_v53 = vld [vmem:[#allocation8 + $0x18] sm:$0xff]   ;;  %p1866_p7 = scmp.lt.s32.totalorder %s1253_s29, %s1864_s17  ;;  %p1867_p11 = scmp.lt.s32.totalorder %s1865_s18, %s1859_s28 }
  0x6c   : > { %1490 = vmatprep.subr.bf16.mxu1 %v1940_v0  ;;  %v1708_v48 = vld [vmem:[#allocation7] sm:$0xff]   ;;  %v1714_v54 = vld [vmem:[#allocation8 + $0x10] sm:$0xff]   ;;  %p1862_p8 = pneg %p1861_p9 }
  0x6d   : > { %v1712_v52 = vld [vmem:[#allocation8 + $0x20] sm:$0xff]   ;;  %p1868_p13 = por %p1867_p11, %p1866_p7 }
  0x6e   : > { %1507 = vmatpush3.bf16.msra.mxu0 %v1694_v16  ;;  %v1388_v55 = vld [vmem:[%s2291_s6] ss:$0 sm:$0xff]  ;;  %v1721_v16 = vld [vmem:[#allocation10 + $0x18] sm:$0xff]  }
  0x6f   : > { %1491 = vmatpush3.bf16.msra.mxu1 %v1688_v10  ;;  %1508 = vmatprep.subr.bf16.mxu0 %v1940_v0  ;;  %v1715_v10 = vld [vmem:[#allocation8 + $0x8] sm:$0xff]   ;;  %v1720_v15 = vld [vmem:[#allocation10 + $0x20] sm:$0xff]   ;;  %p1869_p0 = pnand %p1868_p13, %p1862_p8 }
  0x70   : > { %1492 = vmatprep.subr.bf16.mxu1 %v1940_v0 }
  0x72   : > { %1509 = vmatpush3.bf16.msra.mxu0 %v1695_v17  ;;  %v1722_v17 = vld [vmem:[#allocation10 + $0x10] sm:$0xff]  }
  0x73   : > { %1493 = vmatpush3.bf16.msra.mxu1 %v1689_v11  ;;  %1510 = vmatprep.subr.bf16.mxu0 %v1940_v0  ;;  %v1716_v11 = vld [vmem:[#allocation8] sm:$0xff]  }
  0x74   : > { %1494 = vmatprep.subr.bf16.mxu1 %v1940_v0 }
  0x76   : > { %1511 = vmatpush3.bf16.msra.mxu0 %v1696_v18 }
  0x77   : > { %1495 = vmatpush3.bf16.msra.mxu1 %v1690_v12  ;;  %1512 = vmatprep.subr.bf16.mxu0 %v1940_v0  ;;  %v1717_v12 = vld [vmem:[#allocation10 + $0x38] sm:$0xff]  }
  0x78   : > { %1496 = vmatprep.subr.bf16.mxu1 %v1940_v0 }
  0x7a   : > { %1513 = vmatpush3.bf16.msra.mxu0 %v1697_v19  ;;  %v1406_v19 = vld [vmem:[%s2294_s9] ss:$0 sm:$0xff] }
  0x7b   : > { %1497 = vmatpush3.bf16.msra.mxu1 %v1691_v13  ;;  %1514 = vmatprep.subr.bf16.mxu0 %v1940_v0  ;;  %v1718_v13 = vld [vmem:[#allocation10 + $0x30] sm:$0xff]  }
  0x7c   : > { %1498 = vmatprep.subr.bf16.mxu1 %v1940_v0 }
  0x7e   : > { %1515 = vmatpush3.bf16.msra.mxu0 %v1698_v20 }
  0x7f   : > { %1499 = vmatpush3.bf16.msra.mxu1 %v1692_v14  ;;  %1516 = vmatprep.subr.bf16.mxu0 %v1940_v0  ;;  %v1719_v14 = vld [vmem:[#allocation10 + $0x28] sm:$0xff]  }
  0x80   : > { %1524 = vmatprep.subr.bf16.mxu1 %v1940_v0 }
  0x82   : > { %1517 = vmatpush3.bf16.msra.mxu0 %v1699_v29  ;;  %v1407_v29 = vld [vmem:[%s2296_s11] ss:$0 sm:$0xff] }
  0x83   : > { %1518 = vmatprep.subr.bf16.mxu0 %v1940_v0 }
  0x86   : > { %1519 = vmatpush3.bf16.msra.mxu0 %v1700_v30 }
  0x87   : > { %1544 = vmatprep.subr.bf16.mxu0 %v1940_v0 }
 0x129   : > { %v591_v22 = vpop.f32.mrf.mxu0 }
 0x12a   : > { %v592_v23 = vadd.f32 %v1377_v21, %v591_v22 }
 0x12b   : > { %v1482_v24 = vpop.f32.mrf.mxu0 }
 0x12c   : > { %v597_v25 = vmax.f32 %v592_v23, 0.0 }
 0x12d   : > { %v594_v26 = vpop.f32.mrf.mxu0 }
 0x12e   : > { %v598_v27 = vpack.c.bf16 %v597_v25, %v597_v25 }
 0x12f   : > { %v1483_v28 = vpop.f32.mrf.mxu0 }
 0x130   : > { %1501 = vmatmul.mubr.bf16.vlgmr.msra.gmra.mxu1 %v598_v27  ;;  %v1723_v27 = vld [vmem:[#allocation10 + $0x8] sm:$0xff]   ;;  %v1724_v28 = vld [vmem:[#allocation10] sm:$0xff]  }
 0x131   : > { %1540 = vmatprep.mubr.msk.bf16.mxu1 %vm1942_vm2, %v1940_v0  ;;  %1525 = vmatpush3.bf16.msra.mxu1 %v1701_v31 }
 0x132   : > { %1526 = vmatprep.subr.bf16.mxu1 %v1940_v0 }
 0x135   : > { %1527 = vmatpush3.bf16.msra.mxu1 %v1702_v32 }
 0x136   : > { %1528 = vmatprep.subr.bf16.mxu1 %v1940_v0 }
 0x139   : > { %1529 = vmatpush3.bf16.msra.mxu1 %v1703_v33 }
 0x13a   : > { %1530 = vmatprep.subr.bf16.mxu1 %v1940_v0 }
 0x13d   : > { %1531 = vmatpush3.bf16.msra.mxu1 %v1704_v44 }
 0x13e   : > { %1532 = vmatprep.subr.bf16.mxu1 %v1940_v0 }
 0x141   : > { %1533 = vmatpush3.bf16.msra.mxu1 %v1705_v45 }
 0x142   : > { %1534 = vmatprep.subr.bf16.mxu1 %v1940_v0 }
 0x145   : > { %1535 = vmatpush3.bf16.msra.mxu1 %v1706_v46 }
 0x146   : > { %1536 = vmatprep.subr.bf16.mxu1 %v1940_v0 }
 0x149   : > { %1537 = vmatpush3.bf16.msra.mxu1 %v1707_v47 }
 0x14a   : > { %1538 = vmatprep.subr.bf16.mxu1 %v1940_v0 }
 0x14d   : > { %1539 = vmatpush3.bf16.msra.mxu1 %v1708_v48 }
 0x14e   : > { %1570 = vmatprep.subr.bf16.mxu1 %v1940_v0 }
 0x1f0   : > { %v704_v35 = vpop.f32.mrf.mxu1 }
 0x1f1   : > { %v705_v37 = vadd.f32 %v1379_v34, %v704_v35 }
 0x1f2   : > { %v1502_v38 = vpop.f32.mrf.mxu1 }
 0x1f3   : > { %v710_v39 = vmax.f32 %v705_v37, 0.0  ;;  %v1416_v37 = vld [vmem:[%s2298_s13] ss:$0 sm:$0xff] }
 0x1f4   : > { %v707_v41 = vpop.f32.mrf.mxu1 }
 0x1f5   : > { %v711_v42 = vpack.c.bf16 %v710_v39, %v710_v39 }
 0x1f6   : > { %v1503_v43 = vpop.f32.mrf.mxu1 }
 0x1f7   : > { %1521 = vmatmul.mubr.bf16.vlgmr.msra.gmra.mxu0 %v711_v42 }
 0x1f8   : > { %1545 = vmatpush3.bf16.msra.mxu0 %v937_v40  ;;  %1546 = vmatprep.mubr.msk.bf16.mxu0 %vm1942_vm2, %v1940_v0 }
 0x1f9   : > { %1550 = vmatprep.subr.bf16.mxu0 %v1940_v0 }
 0x1ff   : > { %1547 = vmatmul.mubr.msk.bf16.vlgmr.msra.gmra.mxu0 %vm546_vm3, %v2167_v7 }
 0x200   : > { %1566 = vmatprep.mubr.msk.bf16.mxu0 %vm1942_vm2, %v1940_v0  ;;  %1551 = vmatpush3.bf16.msra.mxu0 %v1709_v49 }
 0x201   : > { %1552 = vmatprep.subr.bf16.mxu0 %v1940_v0 }
 0x204   : > { %1553 = vmatpush3.bf16.msra.mxu0 %v1710_v50 }
 0x205   : > { %1554 = vmatprep.subr.bf16.mxu0 %v1940_v0 }
 0x208   : > { %1555 = vmatpush3.bf16.msra.mxu0 %v1711_v51  ;;  %v1233_v51 = vlaneseq }
 0x209   : > { %1556 = vmatprep.subr.bf16.mxu0 %v1940_v0 }
 0x20c   : > { %1557 = vmatpush3.bf16.msra.mxu0 %v1712_v52 }
 0x20d   : > { %1558 = vmatprep.subr.bf16.mxu0 %v1940_v0 }
 0x210   : > { %1559 = vmatpush3.bf16.msra.mxu0 %v1713_v53 }
 0x211   : > { %1560 = vmatprep.subr.bf16.mxu0 %v1940_v0 }
 0x214   : > { %1561 = vmatpush3.bf16.msra.mxu0 %v1714_v54 }
 0x215   : > { %1562 = vmatprep.subr.bf16.mxu0 %v1940_v0 }
 0x218   : > { %1563 = vmatpush3.bf16.msra.mxu0 %v1715_v10 }
 0x219   : > { %1564 = vmatprep.subr.bf16.mxu0 %v1940_v0 }
 0x21c   : > { %1565 = vmatpush3.bf16.msra.mxu0 %v1716_v11 }
 0x2b7   : > { %v817_v56 = vpop.f32.mrf.mxu0 }
 0x2b8   : > { %v818_v57 = vadd.f32 %v1388_v55, %v817_v56 }
 0x2b9   : > { %v1522_v58 = vpop.f32.mrf.mxu0 }
 0x2ba   : > { %v823_v59 = vrot.slane %v818_v57, 4 }
 0x2bb   : > { %v820_v60 = vpop.f32.mrf.mxu0 }
 0x2bc   : > { %v824_v61 = vadd.f32 %v823_v59, %v818_v57  ;;  %v1234_v57 = vand.u32 127, %v1233_v51 }
 0x2bd   : > { %v1523_v62 = vpop.f32.mrf.mxu0 }
 0x2be   : > { %v825_v63 = vrot.slane %v824_v61, 2  ;;  %vm1235_vm6 = vcmp.lt.s32.totalorder %v1234_v57, 3 }
 0x2bf   : > { %v973_v1 = vpop.f32.mrf.mxu0 }
 0x2c0   : > { %v826_v2 = vadd.f32 %v825_v63, %v824_v61 }
 0x2c1   : > { %v1548_v3 = vpop.f32.mrf.mxu0 }
 0x2c2   : > { %v827_v4 = vrot.slane %v826_v2, 1 }
 0x2c3   : > { %v976_v5 = vpop.f32.mrf.mxu0 }
 0x2c4   : > { %v828_v6 = vadd.f32 %v827_v4, %v826_v2 }
 0x2c5   : > { %v1549_v7 = vpop.f32.mrf.mxu0 }
 0x2c6   : > { %v829_v8 = vmul.f32 0.125, %v828_v6 }
 0x2c8   : > { %v830_v9 = vpack.c.bf16 %v829_v8, %v829_v8 }
 0x2ca   : > { %1541 = vmatmul.mubr.bf16.vlgmr.msra.gmra.mxu1 %v830_v9 }
 0x2cb   : > { %1586 = vmatprep.mubr.msk.bf16.mxu1 %vm1942_vm2, %v1940_v0  ;;  %1571 = vmatpush3.bf16.msra.mxu1 %v1717_v12 }
 0x2cc   : > { %1572 = vmatprep.subr.bf16.mxu1 %v1940_v0 }
 0x2cf   : > { %1573 = vmatpush3.bf16.msra.mxu1 %v1718_v13 }
 0x2d0   : > { %1574 = vmatprep.subr.bf16.mxu1 %v1940_v0 }
 0x2d3   : > { %1575 = vmatpush3.bf16.msra.mxu1 %v1719_v14 }
 0x2d4   : > { %1576 = vmatprep.subr.bf16.mxu1 %v1940_v0 }
 0x2d7   : > { %1577 = vmatpush3.bf16.msra.mxu1 %v1720_v15 }
 0x2d8   : > { %1578 = vmatprep.subr.bf16.mxu1 %v1940_v0 }
 0x2db   : > { %1579 = vmatpush3.bf16.msra.mxu1 %v1721_v16 }
 0x2dc   : > { %1580 = vmatprep.subr.bf16.mxu1 %v1940_v0 }
 0x2df   : > { %1581 = vmatpush3.bf16.msra.mxu1 %v1722_v17 }
 0x2e0   : > { %1582 = vmatprep.subr.bf16.mxu1 %v1940_v0 }
 0x2e3   : > { %1583 = vmatpush3.bf16.msra.mxu1 %v1723_v27 }
 0x2e4   : > { %1584 = vmatprep.subr.bf16.mxu1 %v1940_v0 }
 0x2e7   : > { %1585 = vmatpush3.bf16.msra.mxu1 %v1724_v28 }
 0x38a   : > { %v930_v18 = vpop.f32.mrf.mxu1 }
 0x38b   : > { %v974_v20 = vadd.f32 %v973_v1, %v930_v18 }
 0x38c   : > { %v1542_v21 = vpop.f32.mrf.mxu1 }
 0x38d   : > { %v986_v22 = vadd.f32 %v1406_v19, %v974_v20 }
 0x38e   : > { %v933_v23 = vpop.f32.mrf.mxu1 }
 0x38f   : > { %v987_v24 = vmax.f32 %v986_v22, 0.0 }
 0x390   : > { %v1543_v25 = vpop.f32.mrf.mxu1 }
 0x391   : > { %v988_v26 = vpack.c.bf16 %v987_v24, %v987_v24 }
 0x393   : > { %1567 = vmatmul.mubr.bf16.vlgmr.msra.gmra.mxu0 %v988_v26 }
 0x453   : > { %v1094_v30 = vpop.f32.mrf.mxu0 }
 0x454   : > { %v1095_v31 = vadd.f32 %v1407_v29, %v1094_v30 }
 0x455   : > { %v1568_v32 = vpop.f32.mrf.mxu0 }
 0x456   : > { %v1100_v33 = vmax.f32 %v1095_v31, 0.0 }
 0x457   : > { %v1097_v34 = vpop.f32.mrf.mxu0 }
 0x458   : > { %v1101_v35 = vpack.c.bf16 %v1100_v33, %v1100_v33 }
 0x459   : > { %v1569_v36 = vpop.f32.mrf.mxu0 }
 0x45a   : > { %1587 = vmatmul.mubr.bf16.vlgmr.msra.gmra.mxu1 %v1101_v35 }
 0x51a   : > { %v1207_v0 = vpop.f32.mrf.mxu1 }
 0x51b   : > { %v1208_v38 = vadd.f32 %v1416_v37, %v1207_v0 }
 0x51c   : > { %v1588_v39 = vpop.f32.mrf.mxu1 }
 0x51d   : > { %v1216_v40 = vand.u32 2147483647, %v1208_v38  ;;  %v1213_v54 = vmax.f32 %v1208_v38, 0.0  ;;  %vm1214_vm5 = vcmp.ne.f32.partialorder %v1208_v38, %v1208_v38 }
 0x51e   : > { %v1210_v41 = vpop.f32.mrf.mxu1 }
 0x51f   : > { %v1217_v42 = vsub.f32 0.0, %v1216_v40 }
 0x520   : > { %v1589_v43 = vpop.f32.mrf.mxu1 }
 0x521   : > { %v1218_v44 = vmul.f32 1.442695, %v1217_v42 }
 0x523   : > { %1725 = vpow2.f32 %v1218_v44 }
 0x530   : > { %v1726_v45 = vpop.eup %1725 }
 0x531   : > { %v1220_v46 = vadd.f32 1.0, %v1726_v45  ;;  %v1223_v47 = vmul.f32 -0.5, %v1726_v45  ;;  %v1226_v49 = vand.u32 2147483647, %v1726_v45 }
 0x533   : > { %1727 = vlog2.f32 %v1220_v46  ;;  %v1224_v48 = vadd.f32 1.0, %v1223_v47  ;;  %vm1227_vm4 = vcmp.lt.f32.partialorder %v1226_v49, 0.0004427343 }
 0x535   : > { %v1225_v53 = vmul.f32 %v1726_v45, %v1224_v48 }
 0x540   : > { %v1728_v50 = vpop.eup %1727 }
 0x541   : > { %v1222_v52 = vmul.f32 0.6931472, %v1728_v50 }
 0x543   : > { %v1228_v55 = vsel %vm1227_vm4, %v1225_v53, %v1222_v52 }
 0x544   : > { %v1229_v56 = vadd.f32 %v1228_v55, %v1213_v54 }
 0x546   : > { %v1230_v58 = vsel %vm1214_vm5, %v1208_v38, %v1229_v56 }
 0x547   : > { %v1231_v59 = vmul.f32 0.9, %v1230_v58 }
 0x549   : > { %v1232_v60 = vadd.f32 0.1, %v1231_v59 }
 0x54b   : > { %v1236_v61 = vsel %vm1235_vm6, %v1208_v38, %v1232_v60 }
 0x54c   : > { %1237 = vst [vmem:[%s531_s24] sm:$0xff] %v1236_v61 }
 0x54d   : > { %1872 = shalt.err (!%p1869_p0)
}
 0x54e   : > { %s1873_s27 = scalar_lea.hbm %s2250_s15, 128  ;;  %s1877_s19 = scalar_lea.hbm %s2299_s14, 256 }
 0x54f   : > { %p1874_p3 = scmp.ne.s32.totalorder %s2250_s15, %s1873_s27  ;;  %p1878_p12 = scmp.lt.s32.totalorder %s2250_s15, %s2299_s14 }
 0x550   : > { %p1879_p10 = scmp.lt.s32.totalorder %s1877_s19, %s1873_s27 }
 0x551   : > { %p1875_p1 = pnand %p1874_p3, %p2057_p5 }
 0x552   : > { %p1880_p4 = por %p1879_p10, %p1878_p12 }
 0x553   : > { %p1876_p2 = pneg %p1875_p1 }
 0x555   : > { %p1881_p9 = pnand %p1880_p4, %p1876_p2 }
 0x557   : > { %1884 = shalt.err (!%p1881_p9)
}
 0x558   : > { %1610 = dma.vmem_to_hbm [thread:$0]  (%p2057_p5), %s1253_s29, 128, %s2250_s15, %s1239_s25  }
 0x559 PF: > { %s2326_s5 = sld [smem:[#allocation18_spill]] }
 0x55a   : > { %s2327_s16 = sld [smem:[#allocation16_spill]] }
 0x55f   : > { %p1642_p8 = scmp.ge.s32.totalorder %s2326_s5, 2 }
 0x560   : > { %s1264_s26 = sand.u32 1, %s2327_s16  }
 0x561   : > { %p1629_p7 = pnand %p1642_p8, %p2061_p6  ;;  %s1265_s17 = scalar_lea.sflag [#allocation4], %s1264_s26 }
 0x563   : > { %p1630_p11 = pneg %p1629_p7 }
 0x565   : > { %1914 = dma.done.wait (%p1630_p11), %s1265_s17, 128  }
 0x566   : > { %1916 = vsyncadd (%p1630_p11), %s1265_s17, 4294967168  ;;  %s2329_s16 = sld [smem:[#allocation19_spill]]  ;;  %s2332_s29 = smov %s1923_s30 }
 0x567   : > { %s2330_s18 = sld [smem:[#allocation17_spill]] }
 0x568   : > { %s2331_s15 = sld [smem:[#allocation20_spill]] }
 0x56c   : > { %p27_p13 = scmp.ge.s32.totalorder %s2329_s16, 4  }
 0x56d   : > { %s2333_s30 = smov %s2330_s18 }
 0x56e   :  { %29 = sbr.rel (!%p27_p13) target bundleno = 8 (0x8), region = 132 }
 0x573   :  { %1270 = vsyncpa [#allocation3], 1 }
 0x574   :  { %1272 = vsyncpa [#allocation3 + $0x1], 1 }
 0x575   :  { %1273 = vsyncpa [#allocation6], 1 }
 0x576   :  { %1274 = vsyncpa [#allocation9], 1 }
 0x577   :  { %1275 = vsyncpa [#allocation4], 1 }
 0x578   :  { %1277 = vsyncpa [#allocation4 + $0x1], 1 }

</bundles_post_ra>
